<compile_context>
chip_gen: v7x
topology: tpu7x:2x2x1
jax: 0.10.0
libtpu: 0.0.40
codegen_flags: <defaults>
</compile_context>

<pallas_src>
import math

import numpy as np
import jax
import jax.numpy as jnp
from jax.experimental import pallas as pl
from jax.experimental.pallas import tpu as pltpu


# ----------------------------- host-side helpers -----------------------------


def _xavier_uniform(key, shape, fan_in, fan_out):
    a = math.sqrt(6.0 / (fan_in + fan_out))
    return jax.random.uniform(key, shape, jnp.float32, -a, a)


def _conv_pad_masks(n, h, w, k, pad):
    """(k*k, n*h*w) 0/1 masks: tap (kh, kw) at output pixel (hh, ww) reads an
    in-bounds input pixel (1.0) or the zero-padding halo (0.0)."""
    hs = np.arange(h)[:, None]
    ws = np.arange(w)[None, :]
    rows = []
    for kh in range(k):
        for kw in range(k):
            dh, dw = kh - pad, kw - pad
            valid = ((hs + dh >= 0) & (hs + dh < h)
                     & (ws + dw >= 0) & (ws + dw < w))
            rows.append(valid.astype(np.float32).reshape(1, h * w))
    m = np.concatenate(rows, axis=0)          # (k*k, h*w), identical per sample
    return np.tile(m, (1, n))                 # columns ordered (n, h, w)


def _pool_matrix(n, h, w, k):
    """(n*h*w, n*ho*wo) block-diagonal 0/(1/k^2) average-pooling matrix."""
    ho, wo = (h - k) // k + 1, (w - k) // k + 1
    blk = np.zeros((h * w, ho * wo), np.float32)
    for hh in range(h):
        for ww in range(w):
            po, qo = hh // k, ww // k
            if po < ho and qo < wo:           # crops the ragged edge like torch
                blk[hh * w + ww, po * wo + qo] = 1.0 / (k * k)
    return np.kron(np.eye(n, dtype=np.float32), blk)


def _zero_index_map(ndim):
    return lambda i: (0,) * ndim


# ------------------------------- model class --------------------------------


class RetinaPallas:
    """JAX/Pallas Retina: the whole config-driven Sequential runs as ONE fused
    pallas_call; only the input image and the (N, out) logits touch HBM."""

    def __init__(self, dataset_params, training_params, layers_config, key):
        self.num_bins = dataset_params['num_bins']
        self.input_channel = dataset_params['input_channel']
        self.img_width = dataset_params['img_width']
        self.img_height = dataset_params['img_height']
        self.training_params = training_params

        ops = []
        c_x = c_y = c_in = None
        for layer in layers_config:
            name = layer['name']
            if name == 'Input':
                c_x, c_y, c_in = (layer['img_width'], layer['img_height'],
                                  layer['input_channel'])
            elif name == 'Conv':
                key, sub = jax.random.split(key)
                k, s, p, out = (layer['k_xy'], layer['s_xy'],
                                layer['p_xy'], layer['out_dim'])
                # TODO(synk): only stride-1 "same" convs (2*p == k-1), which is
                #             what the Retina config uses; other strides/pads
                #             need a padded-scratch im2col path.
                assert s == 1 and 2 * p == k - 1, "stride-1 'same' convs only"
                w_oihw = _xavier_uniform(sub, (out, c_in, k, k),
                                         c_in * k * k, out * k * k)
                # (C_out, k*k*C_in), column order (kh, kw, ci) == im2col order.
                w_mat = jnp.transpose(w_oihw, (0, 2, 3, 1)).reshape(
                    out, k * k * c_in)
                ops.append(dict(type='conv', k=k, pad=p, h=c_y, w=c_x,
                                c_in=c_in, c_out=out, w_mat=w_mat,
                                w_hwio=jnp.transpose(w_oihw, (2, 3, 1, 0))))
                c_in = out
                c_x = (c_x - k + 2 * p) // s + 1
                c_y = (c_y - k + 2 * p) // s + 1
            elif name == 'BatchNorm':
                ops.append(dict(type='bn',
                                gamma=jnp.ones((c_in, 1), jnp.float32),
                                beta=jnp.zeros((c_in, 1), jnp.float32)))
            elif name == 'ReLu':
                ops.append(dict(type='relu'))
            elif name == 'AvgPool':
                k, s = layer['k_xy'], layer['s_xy']
                assert k == s, "only non-overlapping pooling supported"
                ops.append(dict(type='avgpool', k=k, h=c_y, w=c_x))
                c_x = (c_x - k) // s + 1
                c_y = (c_y - k) // s + 1
            elif name == 'Flat':
                # The kernel re-lays the (C, spatial) activation out in exact
                # NCHW flatten order, so following Linear weights need no
                # permutation.
                ops.append(dict(type='flat', c=c_in, h=c_y, w=c_x))
                c_in = c_x * c_y * c_in
            elif name == 'Linear':
                key, sub = jax.random.split(key)
                out = layer['out_dim']
                w_oi = _xavier_uniform(sub, (out, c_in), c_in, out)
                ops.append(dict(type='linear', w=jnp.transpose(w_oi)))
                c_in = out
            else:
                # TODO(synk): TemporalConv / DoReFa* / SumPool / IAF / Decimation
                raise NotImplementedError('Unknown Layer: ' + name)
        self.ops = ops
        self.out_dim = c_in

    def __call__(self, x_nchw):
        x = jnp.asarray(x_nchw, jnp.float32)
        n, c, h, w = x.shape
        # NCHW -> (C, N*H*W): channels on sublanes, lane-dense spatial slab.
        x2d = jnp.transpose(x, (1, 0, 2, 3)).reshape(c, n * h * w)

        ops = self.ops
        params, rt, scratch_shapes = [], [], []
        for op in ops:
            t = op['type']
            if t == 'conv':
                k, pad, hh, ww, cin = (op['k'], op['pad'], op['h'], op['w'],
                                       op['c_in'])
                taps = tuple((kh - pad, kw - pad)
                             for kh in range(k) for kw in range(k))
                params.append(op['w_mat'])
                params.append(jnp.asarray(_conv_pad_masks(n, hh, ww, k, pad)))
                rt.append(dict(type='conv', taps=taps, w_stride=ww, c_in=cin,
                               scratch=len(scratch_shapes)))
                scratch_shapes.append(
                    pltpu.VMEM((k * k * cin, n * hh * ww), jnp.float32))
            elif t == 'bn':
                params += [op['gamma'], op['beta']]
                rt.append(dict(type='bn'))
            elif t == 'relu':
                rt.append(dict(type='relu'))
            elif t == 'avgpool':
                params.append(
                    jnp.asarray(_pool_matrix(n, op['h'], op['w'], op['k'])))
                rt.append(dict(type='avgpool'))
            elif t == 'flat':
                hw = op['h'] * op['w']
                rt.append(dict(type='flat', c=op['c'], hw=hw,
                               scratch=len(scratch_shapes)))
                scratch_shapes.append(
                    pltpu.VMEM((n, op['c'] * hw), jnp.float32))
            elif t == 'linear':
                params.append(op['w'])
                rt.append(dict(type='linear'))

        num_in = 1 + len(params)
        out_dim = self.out_dim

        def kernel(*refs):
            x_ref = refs[0]
            prefs = refs[1:num_in]
            o_ref = refs[num_in]
            srefs = refs[num_in + 1:]

            a = x_ref[...]                                  # (C, N*H*W) f32
            pi = 0
            for op in rt:
                t = op['type']
                if t == 'conv':
                    w_mat = prefs[pi][...]                  # (C_out, k*k*C_in)
                    mask_ref = prefs[pi + 1]                # (k*k, S)
                    pi += 2
                    patch_ref = srefs[op['scratch']]        # (k*k*C_in, S)
                    cin, ws = op['c_in'], op['w_stride']
                    for ti, (dh, dw) in enumerate(op['taps']):
                        delta = dh * ws + dw
                        tap = a if delta == 0 else jnp.roll(a, -delta, axis=1)
                        if not (dh == 0 and dw == 0):
                            tap = tap * mask_ref[ti:ti + 1, :]
                        patch_ref[ti * cin:(ti + 1) * cin, :] = tap
                    # TODO(synk): bf16 operands (f32 accumulate) on v6e/v7x.
                    a = jnp.dot(w_mat, patch_ref[...],
                                preferred_element_type=jnp.float32)
                elif t == 'bn':
                    g = prefs[pi][...]                      # (C, 1)
                    b = prefs[pi + 1][...]
                    pi += 2
                    mean = jnp.mean(a, axis=1, keepdims=True)
                    cen = a - mean
                    var = jnp.mean(cen * cen, axis=1, keepdims=True)
                    a = cen * jax.lax.rsqrt(var + 1e-5) * g + b
                elif t == 'relu':
                    a = jnp.maximum(a, 0.0)
                elif t == 'avgpool':
                    pool = prefs[pi][...]                   # (S_in, S_out)
                    pi += 1
                    a = jnp.dot(a, pool, preferred_element_type=jnp.float32)
                elif t == 'flat':
                    # (C, (n, s)) -> (N, c*HW + s): exact torch NCHW flatten
                    # order, staged through a tiny VMEM scratch.
                    flat_ref = srefs[op['scratch']]         # (N, C*H*W)
                    cf, hw = op['c'], op['hw']
                    for cc in range(cf):
                        for ni in range(n):
                            flat_ref[ni:ni + 1, cc * hw:(cc + 1) * hw] = (
                                a[cc:cc + 1, ni * hw:(ni + 1) * hw])
                    a = flat_ref[...]                       # (N, C*H*W)
                elif t == 'linear':
                    a = jnp.dot(a, prefs[pi][...],
                                preferred_element_type=jnp.float32)
                    pi += 1
            o_ref[...] = a.astype(o_ref.dtype)

        in_specs = [pl.BlockSpec(x2d.shape, _zero_index_map(x2d.ndim))]
        for p in params:
            in_specs.append(pl.BlockSpec(p.shape, _zero_index_map(p.ndim)))

        return pl.pallas_call(
            kernel,
            out_shape=jax.ShapeDtypeStruct((n, out_dim), jnp.float32),
            grid=(1,),
            in_specs=in_specs,
            out_specs=pl.BlockSpec((n, out_dim), _zero_index_map(2)),
            scratch_shapes=scratch_shapes,
            compiler_params=pltpu.CompilerParams(
                dimension_semantics=("arbitrary",)),
        )(x2d, *params)


# --------------------------- pure-JAX reference ------------------------------


def _reference_forward(model, x_nchw):
    x = x_nchw.astype(jnp.float32)
    for op in model.ops:
        t = op['type']
        if t == 'conv':
            x = jax.lax.conv_general_dilated(
                x, op['w_hwio'], window_strides=(1, 1),
                padding=[(op['pad'], op['pad']), (op['pad'], op['pad'])],
                dimension_numbers=('NCHW', 'HWIO', 'NCHW'))
        elif t == 'bn':
            mean = jnp.mean(x, axis=(0, 2, 3), keepdims=True)
            var = jnp.mean((x - mean) ** 2, axis=(0, 2, 3), keepdims=True)
            g = op['gamma'].reshape(1, -1, 1, 1)
            b = op['beta'].reshape(1, -1, 1, 1)
            x = (x - mean) * jax.lax.rsqrt(var + 1e-5) * g + b
        elif t == 'relu':
            x = jnp.maximum(x, 0.0)
        elif t == 'avgpool':
            k = op['k']
            nb, cc, hh, ww = x.shape
            x = x[:, :, :hh // k * k, :ww // k * k]
            x = x.reshape(nb, cc, hh // k, k, ww // k, k).mean(axis=(3, 5))
        elif t == 'flat':
            x = x.reshape(x.shape[0], -1)              # NCHW flatten (c-major)
        elif t == 'linear':
            x = x @ op['w']
    return x


# ---------------------------------- main ------------------------------------


if __name__ == "__main__":
    dataset_params = {'num_bins': 10, 'input_channel': 2,
                      'img_width': 16, 'img_height': 16}
    training_params = {'arch_name': 'retina', 'batch_size': 2}
    layers_config = [
        {'name': 'Input', 'img_width': 16, 'img_height': 16, 'input_channel': 2},
        {'name': 'Conv', 'out_dim': 8, 'k_xy': 3, 's_xy': 1, 'p_xy': 1},
        {'name': 'BatchNorm'},
        {'name': 'ReLu'},
        {'name': 'AvgPool', 'k_xy': 2, 's_xy': 2},
        {'name': 'Conv', 'out_dim': 16, 'k_xy': 3, 's_xy': 1, 'p_xy': 1},
        {'name': 'BatchNorm'},
        {'name': 'ReLu'},
        {'name': 'AvgPool', 'k_xy': 2, 's_xy': 2},
        {'name': 'Flat'},
        {'name': 'Linear', 'out_dim': 32},
        {'name': 'ReLu'},
        {'name': 'Linear', 'out_dim': 4},
    ]

    key = jax.random.PRNGKey(0)
    key, xkey, wkey = jax.random.split(key, 3)

    model = RetinaPallas(dataset_params, training_params, layers_config, wkey)

    # PyTorch-style NCHW input: (batch, input_channel, img_height, img_width)
    x = jax.random.normal(xkey, (2, 2, 16, 16), jnp.float32)

    y = jax.block_until_ready(model(x))
    y_ref = jax.block_until_ready(_reference_forward(model, x))

    assert y.shape == (2, 4), y.shape
    assert bool(jnp.all(jnp.isfinite(y)))
    assert bool(jnp.allclose(y, y_ref, atol=1e-2, rtol=1e-2)), (y, y_ref)
    print("KERNEL_OK")
</pallas_src>

<mosaic_0001>
module attributes {stable_mosaic.version = 11 : i64} {
  func.func @kernel(%arg0: i32, %arg1: memref<2x512xf32, #tpu.memory_space<vmem>>, %arg2: memref<8x18xf32, #tpu.memory_space<vmem>>, %arg3: memref<9x512xf32, #tpu.memory_space<vmem>>, %arg4: memref<8x1xf32, #tpu.memory_space<vmem>>, %arg5: memref<8x1xf32, #tpu.memory_space<vmem>>, %arg6: memref<512x128xf32, #tpu.memory_space<vmem>>, %arg7: memref<16x72xf32, #tpu.memory_space<vmem>>, %arg8: memref<9x128xf32, #tpu.memory_space<vmem>>, %arg9: memref<16x1xf32, #tpu.memory_space<vmem>>, %arg10: memref<16x1xf32, #tpu.memory_space<vmem>>, %arg11: memref<128x32xf32, #tpu.memory_space<vmem>>, %arg12: memref<256x32xf32, #tpu.memory_space<vmem>>, %arg13: memref<32x4xf32, #tpu.memory_space<vmem>>, %arg14: memref<2x4xf32, #tpu.memory_space<vmem>>, %arg15: memref<18x512xf32, #tpu.memory_space<vmem>>, %arg16: memref<72x128xf32, #tpu.memory_space<vmem>>, %arg17: memref<2x256xf32, #tpu.memory_space<vmem>>) attributes {dimension_semantics = [#tpu.dimension_semantics<arbitrary>], iteration_bounds = array<i64: 1>, scalar_prefetch = 0 : i64, scratch_operands = 3 : i64, tpu.core_type = #tpu.core_type<tc>, window_params = [{pipeline_mode = #tpu.pipeline_mode<synchronous>, transform_indices = @transform_0, window_bounds = array<i64: 2, 512>}, {pipeline_mode = #tpu.pipeline_mode<synchronous>, transform_indices = @transform_1, window_bounds = array<i64: 8, 18>}, {pipeline_mode = #tpu.pipeline_mode<synchronous>, transform_indices = @transform_2, window_bounds = array<i64: 9, 512>}, {pipeline_mode = #tpu.pipeline_mode<synchronous>, transform_indices = @transform_3, window_bounds = array<i64: 8, 1>}, {pipeline_mode = #tpu.pipeline_mode<synchronous>, transform_indices = @transform_4, window_bounds = array<i64: 8, 1>}, {pipeline_mode = #tpu.pipeline_mode<synchronous>, transform_indices = @transform_5, window_bounds = array<i64: 512, 128>}, {pipeline_mode = #tpu.pipeline_mode<synchronous>, transform_indices = @transform_6, window_bounds = array<i64: 16, 72>}, {pipeline_mode = #tpu.pipeline_mode<synchronous>, transform_indices = @transform_7, window_bounds = array<i64: 9, 128>}, {pipeline_mode = #tpu.pipeline_mode<synchronous>, transform_indices = @transform_8, window_bounds = array<i64: 16, 1>}, {pipeline_mode = #tpu.pipeline_mode<synchronous>, transform_indices = @transform_9, window_bounds = array<i64: 16, 1>}, {pipeline_mode = #tpu.pipeline_mode<synchronous>, transform_indices = @transform_10, window_bounds = array<i64: 128, 32>}, {pipeline_mode = #tpu.pipeline_mode<synchronous>, transform_indices = @transform_11, window_bounds = array<i64: 256, 32>}, {pipeline_mode = #tpu.pipeline_mode<synchronous>, transform_indices = @transform_12, window_bounds = array<i64: 32, 4>}, {pipeline_mode = #tpu.pipeline_mode<synchronous>, transform_indices = @transform_13, window_bounds = array<i64: 2, 4>}]} {
    %c0 = arith.constant 0 : index
    %c0_0 = arith.constant 0 : index
    %0 = vector.load %arg1[%c0, %c0_0] : memref<2x512xf32, #tpu.memory_space<vmem>>, vector<2x512xf32>
    %c0_1 = arith.constant 0 : index
    %c0_2 = arith.constant 0 : index
    %1 = vector.load %arg2[%c0_1, %c0_2] : memref<8x18xf32, #tpu.memory_space<vmem>>, vector<8x18xf32>
    %2 = vector.extract_strided_slice %0 {offsets = [0, 495], sizes = [2, 17], strides = [1, 1]} : vector<2x512xf32> to vector<2x17xf32>
    %3 = vector.extract_strided_slice %0 {offsets = [0, 0], sizes = [2, 495], strides = [1, 1]} : vector<2x512xf32> to vector<2x495xf32>
    %4 = tpu.concatenate %2, %3 in 1 : vector<2x17xf32>, vector<2x495xf32> -> vector<2x512xf32>
    %c0_3 = arith.constant 0 : index
    %c0_4 = arith.constant 0 : index
    %5 = vector.load %arg3[%c0_3, %c0_4] : memref<9x512xf32, #tpu.memory_space<vmem>>, vector<1x512xf32>
    %6 = vector.broadcast %5 : vector<1x512xf32> to vector<2x512xf32>
    %7 = arith.mulf %4, %6 : vector<2x512xf32>
    %c0_5 = arith.constant 0 : index
    %c0_6 = arith.constant 0 : index
    %8 = vector.load %arg15[%c0_5, %c0_6] : memref<18x512xf32, #tpu.memory_space<vmem>>, vector<2x512xf32>
    tpu.vector_store %arg15[%c0_5, %c0_6], %7 {strides = array<i32>} : memref<18x512xf32, #tpu.memory_space<vmem>>, vector<2x512xf32>,
    %9 = vector.extract_strided_slice %0 {offsets = [0, 496], sizes = [2, 16], strides = [1, 1]} : vector<2x512xf32> to vector<2x16xf32>
    %10 = vector.extract_strided_slice %0 {offsets = [0, 0], sizes = [2, 496], strides = [1, 1]} : vector<2x512xf32> to vector<2x496xf32>
    %11 = tpu.concatenate %9, %10 in 1 : vector<2x16xf32>, vector<2x496xf32> -> vector<2x512xf32>
    %c1 = arith.constant 1 : index
    %c0_7 = arith.constant 0 : index
    %12 = vector.load %arg3[%c1, %c0_7] : memref<9x512xf32, #tpu.memory_space<vmem>>, vector<1x512xf32>
    %13 = vector.broadcast %12 : vector<1x512xf32> to vector<2x512xf32>
    %14 = arith.mulf %11, %13 : vector<2x512xf32>
    %c2 = arith.constant 2 : index
    %c0_8 = arith.constant 0 : index
    %15 = vector.load %arg15[%c2, %c0_8] : memref<18x512xf32, #tpu.memory_space<vmem>>, vector<2x512xf32>
    tpu.vector_store %arg15[%c2, %c0_8], %14 {strides = array<i32>} : memref<18x512xf32, #tpu.memory_space<vmem>>, vector<2x512xf32>,
    %16 = vector.extract_strided_slice %0 {offsets = [0, 497], sizes = [2, 15], strides = [1, 1]} : vector<2x512xf32> to vector<2x15xf32>
    %17 = vector.extract_strided_slice %0 {offsets = [0, 0], sizes = [2, 497], strides = [1, 1]} : vector<2x512xf32> to vector<2x497xf32>
    %18 = tpu.concatenate %16, %17 in 1 : vector<2x15xf32>, vector<2x497xf32> -> vector<2x512xf32>
    %c2_9 = arith.constant 2 : index
    %c0_10 = arith.constant 0 : index
    %19 = vector.load %arg3[%c2_9, %c0_10] : memref<9x512xf32, #tpu.memory_space<vmem>>, vector<1x512xf32>
    %20 = vector.broadcast %19 : vector<1x512xf32> to vector<2x512xf32>
    %21 = arith.mulf %18, %20 : vector<2x512xf32>
    %c4 = arith.constant 4 : index
    %c0_11 = arith.constant 0 : index
    %22 = vector.load %arg15[%c4, %c0_11] : memref<18x512xf32, #tpu.memory_space<vmem>>, vector<2x512xf32>
    tpu.vector_store %arg15[%c4, %c0_11], %21 {strides = array<i32>} : memref<18x512xf32, #tpu.memory_space<vmem>>, vector<2x512xf32>,
    %23 = vector.extract_strided_slice %0 {offsets = [0, 511], sizes = [2, 1], strides = [1, 1]} : vector<2x512xf32> to vector<2x1xf32>
    %24 = vector.extract_strided_slice %0 {offsets = [0, 0], sizes = [2, 511], strides = [1, 1]} : vector<2x512xf32> to vector<2x511xf32>
    %25 = tpu.concatenate %23, %24 in 1 : vector<2x1xf32>, vector<2x511xf32> -> vector<2x512xf32>
    %c3 = arith.constant 3 : index
    %c0_12 = arith.constant 0 : index
    %26 = vector.load %arg3[%c3, %c0_12] : memref<9x512xf32, #tpu.memory_space<vmem>>, vector<1x512xf32>
    %27 = vector.broadcast %26 : vector<1x512xf32> to vector<2x512xf32>
    %28 = arith.mulf %25, %27 : vector<2x512xf32>
    %c6 = arith.constant 6 : index
    %c0_13 = arith.constant 0 : index
    %29 = vector.load %arg15[%c6, %c0_13] : memref<18x512xf32, #tpu.memory_space<vmem>>, vector<2x512xf32>
    tpu.vector_store %arg15[%c6, %c0_13], %28 {strides = array<i32>} : memref<18x512xf32, #tpu.memory_space<vmem>>, vector<2x512xf32>,
    %c8 = arith.constant 8 : index
    %c0_14 = arith.constant 0 : index
    %30 = vector.load %arg15[%c8, %c0_14] : memref<18x512xf32, #tpu.memory_space<vmem>>, vector<2x512xf32>
    tpu.vector_store %arg15[%c8, %c0_14], %0 {strides = array<i32>} : memref<18x512xf32, #tpu.memory_space<vmem>>, vector<2x512xf32>,
    %31 = vector.extract_strided_slice %0 {offsets = [0, 1], sizes = [2, 511], strides = [1, 1]} : vector<2x512xf32> to vector<2x511xf32>
    %32 = vector.extract_strided_slice %0 {offsets = [0, 0], sizes = [2, 1], strides = [1, 1]} : vector<2x512xf32> to vector<2x1xf32>
    %33 = tpu.concatenate %31, %32 in 1 : vector<2x511xf32>, vector<2x1xf32> -> vector<2x512xf32>
    %c5 = arith.constant 5 : index
    %c0_15 = arith.constant 0 : index
    %34 = vector.load %arg3[%c5, %c0_15] : memref<9x512xf32, #tpu.memory_space<vmem>>, vector<1x512xf32>
    %35 = vector.broadcast %34 : vector<1x512xf32> to vector<2x512xf32>
    %36 = arith.mulf %33, %35 : vector<2x512xf32>
    %c10 = arith.constant 10 : index
    %c0_16 = arith.constant 0 : index
    %37 = vector.load %arg15[%c10, %c0_16] : memref<18x512xf32, #tpu.memory_space<vmem>>, vector<2x512xf32>
    tpu.vector_store %arg15[%c10, %c0_16], %36 {strides = array<i32>} : memref<18x512xf32, #tpu.memory_space<vmem>>, vector<2x512xf32>,
    %38 = vector.extract_strided_slice %0 {offsets = [0, 15], sizes = [2, 497], strides = [1, 1]} : vector<2x512xf32> to vector<2x497xf32>
    %39 = vector.extract_strided_slice %0 {offsets = [0, 0], sizes = [2, 15], strides = [1, 1]} : vector<2x512xf32> to vector<2x15xf32>
    %40 = tpu.concatenate %38, %39 in 1 : vector<2x497xf32>, vector<2x15xf32> -> vector<2x512xf32>
    %c6_17 = arith.constant 6 : index
    %c0_18 = arith.constant 0 : index
    %41 = vector.load %arg3[%c6_17, %c0_18] : memref<9x512xf32, #tpu.memory_space<vmem>>, vector<1x512xf32>
    %42 = vector.broadcast %41 : vector<1x512xf32> to vector<2x512xf32>
    %43 = arith.mulf %40, %42 : vector<2x512xf32>
    %c12 = arith.constant 12 : index
    %c0_19 = arith.constant 0 : index
    %44 = vector.load %arg15[%c12, %c0_19] : memref<18x512xf32, #tpu.memory_space<vmem>>, vector<2x512xf32>
    tpu.vector_store %arg15[%c12, %c0_19], %43 {strides = array<i32>} : memref<18x512xf32, #tpu.memory_space<vmem>>, vector<2x512xf32>,
    %45 = vector.extract_strided_slice %0 {offsets = [0, 16], sizes = [2, 496], strides = [1, 1]} : vector<2x512xf32> to vector<2x496xf32>
    %46 = vector.extract_strided_slice %0 {offsets = [0, 0], sizes = [2, 16], strides = [1, 1]} : vector<2x512xf32> to vector<2x16xf32>
    %47 = tpu.concatenate %45, %46 in 1 : vector<2x496xf32>, vector<2x16xf32> -> vector<2x512xf32>
    %c7 = arith.constant 7 : index
    %c0_20 = arith.constant 0 : index
    %48 = vector.load %arg3[%c7, %c0_20] : memref<9x512xf32, #tpu.memory_space<vmem>>, vector<1x512xf32>
    %49 = vector.broadcast %48 : vector<1x512xf32> to vector<2x512xf32>
    %50 = arith.mulf %47, %49 : vector<2x512xf32>
    %c14 = arith.constant 14 : index
    %c0_21 = arith.constant 0 : index
    %51 = vector.load %arg15[%c14, %c0_21] : memref<18x512xf32, #tpu.memory_space<vmem>>, vector<2x512xf32>
    tpu.vector_store %arg15[%c14, %c0_21], %50 {strides = array<i32>} : memref<18x512xf32, #tpu.memory_space<vmem>>, vector<2x512xf32>,
    %52 = vector.extract_strided_slice %0 {offsets = [0, 17], sizes = [2, 495], strides = [1, 1]} : vector<2x512xf32> to vector<2x495xf32>
    %53 = vector.extract_strided_slice %0 {offsets = [0, 0], sizes = [2, 17], strides = [1, 1]} : vector<2x512xf32> to vector<2x17xf32>
    %54 = tpu.concatenate %52, %53 in 1 : vector<2x495xf32>, vector<2x17xf32> -> vector<2x512xf32>
    %c8_22 = arith.constant 8 : index
    %c0_23 = arith.constant 0 : index
    %55 = vector.load %arg3[%c8_22, %c0_23] : memref<9x512xf32, #tpu.memory_space<vmem>>, vector<1x512xf32>
    %56 = vector.broadcast %55 : vector<1x512xf32> to vector<2x512xf32>
    %57 = arith.mulf %54, %56 : vector<2x512xf32>
    %c16 = arith.constant 16 : index
    %c0_24 = arith.constant 0 : index
    %58 = vector.load %arg15[%c16, %c0_24] : memref<18x512xf32, #tpu.memory_space<vmem>>, vector<2x512xf32>
    tpu.vector_store %arg15[%c16, %c0_24], %57 {strides = array<i32>} : memref<18x512xf32, #tpu.memory_space<vmem>>, vector<2x512xf32>,
    %c0_25 = arith.constant 0 : index
    %c0_26 = arith.constant 0 : index
    %59 = vector.load %arg15[%c0_25, %c0_26] : memref<18x512xf32, #tpu.memory_space<vmem>>, vector<18x512xf32>
    %cst = arith.constant dense<0.000000e+00> : vector<8x512xf32>
    %60 = tpu.matmul %1, %59, %cst {dimension_numbers = #tpu.dot_dimension_numbers<[1], [0], [0], [1], [0, 0, 1, 1], [], []>} : vector<8x18xf32>, vector<18x512xf32>, vector<8x512xf32> -> vector<8x512xf32>
    %c0_27 = arith.constant 0 : index
    %c0_28 = arith.constant 0 : index
    %61 = vector.load %arg4[%c0_27, %c0_28] : memref<8x1xf32, #tpu.memory_space<vmem>>, vector<8x1xf32>
    %c0_29 = arith.constant 0 : index
    %c0_30 = arith.constant 0 : index
    %62 = vector.load %arg5[%c0_29, %c0_30] : memref<8x1xf32, #tpu.memory_space<vmem>>, vector<8x1xf32>
    %cst_31 = arith.constant dense<0.000000e+00> : vector<8xf32>
    %63 = vector.multi_reduction <add>, %60, %cst_31 [1] : vector<8x512xf32> to vector<8xf32>
    %64 = vector.shape_cast %63 : vector<8xf32> to vector<8x1xf32>
    %cst_32 = arith.constant 5.120000e+02 : f32
    %65 = vector.broadcast %cst_32 : f32 to vector<8x1xf32>
    %66 = arith.divf %64, %65 : vector<8x1xf32>
    %67 = vector.broadcast %66 : vector<8x1xf32> to vector<8x512xf32>
    %68 = arith.subf %60, %67 : vector<8x512xf32>
    %69 = arith.mulf %68, %68 : vector<8x512xf32>
    %cst_33 = arith.constant dense<0.000000e+00> : vector<8xf32>
    %70 = vector.multi_reduction <add>, %69, %cst_33 [1] : vector<8x512xf32> to vector<8xf32>
    %71 = vector.shape_cast %70 : vector<8xf32> to vector<8x1xf32>
    %cst_34 = arith.constant 5.120000e+02 : f32
    %72 = vector.broadcast %cst_34 : f32 to vector<8x1xf32>
    %73 = arith.divf %71, %72 : vector<8x1xf32>
    %cst_35 = arith.constant 9.99999974E-6 : f32
    %74 = vector.broadcast %cst_35 : f32 to vector<8x1xf32>
    %75 = arith.addf %73, %74 : vector<8x1xf32>
    %76 = math.rsqrt %75 : vector<8x1xf32>
    %77 = vector.broadcast %76 : vector<8x1xf32> to vector<8x512xf32>
    %78 = arith.mulf %68, %77 : vector<8x512xf32>
    %79 = vector.broadcast %61 : vector<8x1xf32> to vector<8x512xf32>
    %80 = arith.mulf %78, %79 : vector<8x512xf32>
    %81 = vector.broadcast %62 : vector<8x1xf32> to vector<8x512xf32>
    %82 = arith.addf %80, %81 : vector<8x512xf32>
    %cst_36 = arith.constant 0.000000e+00 : f32
    %83 = vector.broadcast %cst_36 : f32 to vector<8x512xf32>
    %84 = arith.maximumf %82, %83 : vector<8x512xf32>
    %c0_37 = arith.constant 0 : index
    %c0_38 = arith.constant 0 : index
    %85 = vector.load %arg6[%c0_37, %c0_38] : memref<512x128xf32, #tpu.memory_space<vmem>>, vector<512x128xf32>
    %cst_39 = arith.constant dense<0.000000e+00> : vector<8x128xf32>
    %86 = tpu.matmul %84, %85, %cst_39 {dimension_numbers = #tpu.dot_dimension_numbers<[1], [0], [0], [1], [0, 0, 1, 1], [], []>} : vector<8x512xf32>, vector<512x128xf32>, vector<8x128xf32> -> vector<8x128xf32>
    %c0_40 = arith.constant 0 : index
    %c0_41 = arith.constant 0 : index
    %87 = vector.load %arg7[%c0_40, %c0_41] : memref<16x72xf32, #tpu.memory_space<vmem>>, vector<16x72xf32>
    %88 = vector.extract_strided_slice %86 {offsets = [0, 119], sizes = [8, 9], strides = [1, 1]} : vector<8x128xf32> to vector<8x9xf32>
    %89 = vector.extract_strided_slice %86 {offsets = [0, 0], sizes = [8, 119], strides = [1, 1]} : vector<8x128xf32> to vector<8x119xf32>
    %90 = tpu.concatenate %88, %89 in 1 : vector<8x9xf32>, vector<8x119xf32> -> vector<8x128xf32>
    %c0_42 = arith.constant 0 : index
    %c0_43 = arith.constant 0 : index
    %91 = vector.load %arg8[%c0_42, %c0_43] : memref<9x128xf32, #tpu.memory_space<vmem>>, vector<1x128xf32>
    %92 = vector.broadcast %91 : vector<1x128xf32> to vector<8x128xf32>
    %93 = arith.mulf %90, %92 : vector<8x128xf32>
    %c0_44 = arith.constant 0 : index
    %c0_45 = arith.constant 0 : index
    %94 = vector.load %arg16[%c0_44, %c0_45] : memref<72x128xf32, #tpu.memory_space<vmem>>, vector<8x128xf32>
    tpu.vector_store %arg16[%c0_44, %c0_45], %93 {strides = array<i32>} : memref<72x128xf32, #tpu.memory_space<vmem>>, vector<8x128xf32>,
    %95 = vector.extract_strided_slice %86 {offsets = [0, 120], sizes = [8, 8], strides = [1, 1]} : vector<8x128xf32> to vector<8x8xf32>
    %96 = vector.extract_strided_slice %86 {offsets = [0, 0], sizes = [8, 120], strides = [1, 1]} : vector<8x128xf32> to vector<8x120xf32>
    %97 = tpu.concatenate %95, %96 in 1 : vector<8x8xf32>, vector<8x120xf32> -> vector<8x128xf32>
    %c1_46 = arith.constant 1 : index
    %c0_47 = arith.constant 0 : index
    %98 = vector.load %arg8[%c1_46, %c0_47] : memref<9x128xf32, #tpu.memory_space<vmem>>, vector<1x128xf32>
    %99 = vector.broadcast %98 : vector<1x128xf32> to vector<8x128xf32>
    %100 = arith.mulf %97, %99 : vector<8x128xf32>
    %c8_48 = arith.constant 8 : index
    %c0_49 = arith.constant 0 : index
    %101 = vector.load %arg16[%c8_48, %c0_49] : memref<72x128xf32, #tpu.memory_space<vmem>>, vector<8x128xf32>
    tpu.vector_store %arg16[%c8_48, %c0_49], %100 {strides = array<i32>} : memref<72x128xf32, #tpu.memory_space<vmem>>, vector<8x128xf32>,
    %102 = vector.extract_strided_slice %86 {offsets = [0, 121], sizes = [8, 7], strides = [1, 1]} : vector<8x128xf32> to vector<8x7xf32>
    %103 = vector.extract_strided_slice %86 {offsets = [0, 0], sizes = [8, 121], strides = [1, 1]} : vector<8x128xf32> to vector<8x121xf32>
    %104 = tpu.concatenate %102, %103 in 1 : vector<8x7xf32>, vector<8x121xf32> -> vector<8x128xf32>
    %c2_50 = arith.constant 2 : index
    %c0_51 = arith.constant 0 : index
    %105 = vector.load %arg8[%c2_50, %c0_51] : memref<9x128xf32, #tpu.memory_space<vmem>>, vector<1x128xf32>
    %106 = vector.broadcast %105 : vector<1x128xf32> to vector<8x128xf32>
    %107 = arith.mulf %104, %106 : vector<8x128xf32>
    %c16_52 = arith.constant 16 : index
    %c0_53 = arith.constant 0 : index
    %108 = vector.load %arg16[%c16_52, %c0_53] : memref<72x128xf32, #tpu.memory_space<vmem>>, vector<8x128xf32>
    tpu.vector_store %arg16[%c16_52, %c0_53], %107 {strides = array<i32>} : memref<72x128xf32, #tpu.memory_space<vmem>>, vector<8x128xf32>,
    %109 = vector.extract_strided_slice %86 {offsets = [0, 127], sizes = [8, 1], strides = [1, 1]} : vector<8x128xf32> to vector<8x1xf32>
    %110 = vector.extract_strided_slice %86 {offsets = [0, 0], sizes = [8, 127], strides = [1, 1]} : vector<8x128xf32> to vector<8x127xf32>
    %111 = tpu.concatenate %109, %110 in 1 : vector<8x1xf32>, vector<8x127xf32> -> vector<8x128xf32>
    %c3_54 = arith.constant 3 : index
    %c0_55 = arith.constant 0 : index
    %112 = vector.load %arg8[%c3_54, %c0_55] : memref<9x128xf32, #tpu.memory_space<vmem>>, vector<1x128xf32>
    %113 = vector.broadcast %112 : vector<1x128xf32> to vector<8x128xf32>
    %114 = arith.mulf %111, %113 : vector<8x128xf32>
    %c24 = arith.constant 24 : index
    %c0_56 = arith.constant 0 : index
    %115 = vector.load %arg16[%c24, %c0_56] : memref<72x128xf32, #tpu.memory_space<vmem>>, vector<8x128xf32>
    tpu.vector_store %arg16[%c24, %c0_56], %114 {strides = array<i32>} : memref<72x128xf32, #tpu.memory_space<vmem>>, vector<8x128xf32>,
    %c32 = arith.constant 32 : index
    %c0_57 = arith.constant 0 : index
    %116 = vector.load %arg16[%c32, %c0_57] : memref<72x128xf32, #tpu.memory_space<vmem>>, vector<8x128xf32>
    tpu.vector_store %arg16[%c32, %c0_57], %86 {strides = array<i32>} : memref<72x128xf32, #tpu.memory_space<vmem>>, vector<8x128xf32>,
    %117 = vector.extract_strided_slice %86 {offsets = [0, 1], sizes = [8, 127], strides = [1, 1]} : vector<8x128xf32> to vector<8x127xf32>
    %118 = vector.extract_strided_slice %86 {offsets = [0, 0], sizes = [8, 1], strides = [1, 1]} : vector<8x128xf32> to vector<8x1xf32>
    %119 = tpu.concatenate %117, %118 in 1 : vector<8x127xf32>, vector<8x1xf32> -> vector<8x128xf32>
    %c5_58 = arith.constant 5 : index
    %c0_59 = arith.constant 0 : index
    %120 = vector.load %arg8[%c5_58, %c0_59] : memref<9x128xf32, #tpu.memory_space<vmem>>, vector<1x128xf32>
    %121 = vector.broadcast %120 : vector<1x128xf32> to vector<8x128xf32>
    %122 = arith.mulf %119, %121 : vector<8x128xf32>
    %c40 = arith.constant 40 : index
    %c0_60 = arith.constant 0 : index
    %123 = vector.load %arg16[%c40, %c0_60] : memref<72x128xf32, #tpu.memory_space<vmem>>, vector<8x128xf32>
    tpu.vector_store %arg16[%c40, %c0_60], %122 {strides = array<i32>} : memref<72x128xf32, #tpu.memory_space<vmem>>, vector<8x128xf32>,
    %124 = vector.extract_strided_slice %86 {offsets = [0, 7], sizes = [8, 121], strides = [1, 1]} : vector<8x128xf32> to vector<8x121xf32>
    %125 = vector.extract_strided_slice %86 {offsets = [0, 0], sizes = [8, 7], strides = [1, 1]} : vector<8x128xf32> to vector<8x7xf32>
    %126 = tpu.concatenate %124, %125 in 1 : vector<8x121xf32>, vector<8x7xf32> -> vector<8x128xf32>
    %c6_61 = arith.constant 6 : index
    %c0_62 = arith.constant 0 : index
    %127 = vector.load %arg8[%c6_61, %c0_62] : memref<9x128xf32, #tpu.memory_space<vmem>>, vector<1x128xf32>
    %128 = vector.broadcast %127 : vector<1x128xf32> to vector<8x128xf32>
    %129 = arith.mulf %126, %128 : vector<8x128xf32>
    %c48 = arith.constant 48 : index
    %c0_63 = arith.constant 0 : index
    %130 = vector.load %arg16[%c48, %c0_63] : memref<72x128xf32, #tpu.memory_space<vmem>>, vector<8x128xf32>
    tpu.vector_store %arg16[%c48, %c0_63], %129 {strides = array<i32>} : memref<72x128xf32, #tpu.memory_space<vmem>>, vector<8x128xf32>,
    %131 = vector.extract_strided_slice %86 {offsets = [0, 8], sizes = [8, 120], strides = [1, 1]} : vector<8x128xf32> to vector<8x120xf32>
    %132 = vector.extract_strided_slice %86 {offsets = [0, 0], sizes = [8, 8], strides = [1, 1]} : vector<8x128xf32> to vector<8x8xf32>
    %133 = tpu.concatenate %131, %132 in 1 : vector<8x120xf32>, vector<8x8xf32> -> vector<8x128xf32>
    %c7_64 = arith.constant 7 : index
    %c0_65 = arith.constant 0 : index
    %134 = vector.load %arg8[%c7_64, %c0_65] : memref<9x128xf32, #tpu.memory_space<vmem>>, vector<1x128xf32>
    %135 = vector.broadcast %134 : vector<1x128xf32> to vector<8x128xf32>
    %136 = arith.mulf %133, %135 : vector<8x128xf32>
    %c56 = arith.constant 56 : index
    %c0_66 = arith.constant 0 : index
    %137 = vector.load %arg16[%c56, %c0_66] : memref<72x128xf32, #tpu.memory_space<vmem>>, vector<8x128xf32>
    tpu.vector_store %arg16[%c56, %c0_66], %136 {strides = array<i32>} : memref<72x128xf32, #tpu.memory_space<vmem>>, vector<8x128xf32>,
    %138 = vector.extract_strided_slice %86 {offsets = [0, 9], sizes = [8, 119], strides = [1, 1]} : vector<8x128xf32> to vector<8x119xf32>
    %139 = vector.extract_strided_slice %86 {offsets = [0, 0], sizes = [8, 9], strides = [1, 1]} : vector<8x128xf32> to vector<8x9xf32>
    %140 = tpu.concatenate %138, %139 in 1 : vector<8x119xf32>, vector<8x9xf32> -> vector<8x128xf32>
    %c8_67 = arith.constant 8 : index
    %c0_68 = arith.constant 0 : index
    %141 = vector.load %arg8[%c8_67, %c0_68] : memref<9x128xf32, #tpu.memory_space<vmem>>, vector<1x128xf32>
    %142 = vector.broadcast %141 : vector<1x128xf32> to vector<8x128xf32>
    %143 = arith.mulf %140, %142 : vector<8x128xf32>
    %c64 = arith.constant 64 : index
    %c0_69 = arith.constant 0 : index
    %144 = vector.load %arg16[%c64, %c0_69] : memref<72x128xf32, #tpu.memory_space<vmem>>, vector<8x128xf32>
    tpu.vector_store %arg16[%c64, %c0_69], %143 {strides = array<i32>} : memref<72x128xf32, #tpu.memory_space<vmem>>, vector<8x128xf32>,
    %c0_70 = arith.constant 0 : index
    %c0_71 = arith.constant 0 : index
    %145 = vector.load %arg16[%c0_70, %c0_71] : memref<72x128xf32, #tpu.memory_space<vmem>>, vector<72x128xf32>
    %cst_72 = arith.constant dense<0.000000e+00> : vector<16x128xf32>
    %146 = tpu.matmul %87, %145, %cst_72 {dimension_numbers = #tpu.dot_dimension_numbers<[1], [0], [0], [1], [0, 0, 1, 1], [], []>} : vector<16x72xf32>, vector<72x128xf32>, vector<16x128xf32> -> vector<16x128xf32>
    %c0_73 = arith.constant 0 : index
    %c0_74 = arith.constant 0 : index
    %147 = vector.load %arg9[%c0_73, %c0_74] : memref<16x1xf32, #tpu.memory_space<vmem>>, vector<16x1xf32>
    %c0_75 = arith.constant 0 : index
    %c0_76 = arith.constant 0 : index
    %148 = vector.load %arg10[%c0_75, %c0_76] : memref<16x1xf32, #tpu.memory_space<vmem>>, vector<16x1xf32>
    %cst_77 = arith.constant dense<0.000000e+00> : vector<16xf32>
    %149 = vector.multi_reduction <add>, %146, %cst_77 [1] : vector<16x128xf32> to vector<16xf32>
    %150 = vector.shape_cast %149 : vector<16xf32> to vector<16x1xf32>
    %cst_78 = arith.constant 1.280000e+02 : f32
    %151 = vector.broadcast %cst_78 : f32 to vector<16x1xf32>
    %152 = arith.divf %150, %151 : vector<16x1xf32>
    %153 = vector.broadcast %152 : vector<16x1xf32> to vector<16x128xf32>
    %154 = arith.subf %146, %153 : vector<16x128xf32>
    %155 = arith.mulf %154, %154 : vector<16x128xf32>
    %cst_79 = arith.constant dense<0.000000e+00> : vector<16xf32>
    %156 = vector.multi_reduction <add>, %155, %cst_79 [1] : vector<16x128xf32> to vector<16xf32>
    %157 = vector.shape_cast %156 : vector<16xf32> to vector<16x1xf32>
    %cst_80 = arith.constant 1.280000e+02 : f32
    %158 = vector.broadcast %cst_80 : f32 to vector<16x1xf32>
    %159 = arith.divf %157, %158 : vector<16x1xf32>
    %cst_81 = arith.constant 9.99999974E-6 : f32
    %160 = vector.broadcast %cst_81 : f32 to vector<16x1xf32>
    %161 = arith.addf %159, %160 : vector<16x1xf32>
    %162 = math.rsqrt %161 : vector<16x1xf32>
    %163 = vector.broadcast %162 : vector<16x1xf32> to vector<16x128xf32>
    %164 = arith.mulf %154, %163 : vector<16x128xf32>
    %165 = vector.broadcast %147 : vector<16x1xf32> to vector<16x128xf32>
    %166 = arith.mulf %164, %165 : vector<16x128xf32>
    %167 = vector.broadcast %148 : vector<16x1xf32> to vector<16x128xf32>
    %168 = arith.addf %166, %167 : vector<16x128xf32>
    %cst_82 = arith.constant 0.000000e+00 : f32
    %169 = vector.broadcast %cst_82 : f32 to vector<16x128xf32>
    %170 = arith.maximumf %168, %169 : vector<16x128xf32>
    %c0_83 = arith.constant 0 : index
    %c0_84 = arith.constant 0 : index
    %171 = vector.load %arg11[%c0_83, %c0_84] : memref<128x32xf32, #tpu.memory_space<vmem>>, vector<128x32xf32>
    %cst_85 = arith.constant dense<0.000000e+00> : vector<16x32xf32>
    %172 = tpu.matmul %170, %171, %cst_85 {dimension_numbers = #tpu.dot_dimension_numbers<[1], [0], [0], [1], [0, 0, 1, 1], [], []>} : vector<16x128xf32>, vector<128x32xf32>, vector<16x32xf32> -> vector<16x32xf32>
    %173 = vector.extract_strided_slice %172 {offsets = [0, 0], sizes = [1, 16], strides = [1, 1]} : vector<16x32xf32> to vector<1x16xf32>
    %c0_86 = arith.constant 0 : index
    %c0_87 = arith.constant 0 : index
    %174 = vector.load %arg17[%c0_86, %c0_87] : memref<2x256xf32, #tpu.memory_space<vmem>>, vector<1x16xf32>
    tpu.vector_store %arg17[%c0_86, %c0_87], %173 {strides = array<i32>} : memref<2x256xf32, #tpu.memory_space<vmem>>, vector<1x16xf32>,
    %175 = vector.extract_strided_slice %172 {offsets = [0, 16], sizes = [1, 16], strides = [1, 1]} : vector<16x32xf32> to vector<1x16xf32>
    %c1_88 = arith.constant 1 : index
    %c0_89 = arith.constant 0 : index
    %176 = vector.load %arg17[%c1_88, %c0_89] : memref<2x256xf32, #tpu.memory_space<vmem>>, vector<1x16xf32>
    tpu.vector_store %arg17[%c1_88, %c0_89], %175 {strides = array<i32>} : memref<2x256xf32, #tpu.memory_space<vmem>>, vector<1x16xf32>,
    %177 = vector.extract_strided_slice %172 {offsets = [1, 0], sizes = [1, 16], strides = [1, 1]} : vector<16x32xf32> to vector<1x16xf32>
    %c0_90 = arith.constant 0 : index
    %c16_91 = arith.constant 16 : index
    %178 = vector.load %arg17[%c0_90, %c16_91] : memref<2x256xf32, #tpu.memory_space<vmem>>, vector<1x16xf32>
    tpu.vector_store %arg17[%c0_90, %c16_91], %177 {strides = array<i32>} : memref<2x256xf32, #tpu.memory_space<vmem>>, vector<1x16xf32>,
    %179 = vector.extract_strided_slice %172 {offsets = [1, 16], sizes = [1, 16], strides = [1, 1]} : vector<16x32xf32> to vector<1x16xf32>
    %c1_92 = arith.constant 1 : index
    %c16_93 = arith.constant 16 : index
    %180 = vector.load %arg17[%c1_92, %c16_93] : memref<2x256xf32, #tpu.memory_space<vmem>>, vector<1x16xf32>
    tpu.vector_store %arg17[%c1_92, %c16_93], %179 {strides = array<i32>} : memref<2x256xf32, #tpu.memory_space<vmem>>, vector<1x16xf32>,
    %181 = vector.extract_strided_slice %172 {offsets = [2, 0], sizes = [1, 16], strides = [1, 1]} : vector<16x32xf32> to vector<1x16xf32>
    %c0_94 = arith.constant 0 : index
    %c32_95 = arith.constant 32 : index
    %182 = vector.load %arg17[%c0_94, %c32_95] : memref<2x256xf32, #tpu.memory_space<vmem>>, vector<1x16xf32>
    tpu.vector_store %arg17[%c0_94, %c32_95], %181 {strides = array<i32>} : memref<2x256xf32, #tpu.memory_space<vmem>>, vector<1x16xf32>,
    %183 = vector.extract_strided_slice %172 {offsets = [2, 16], sizes = [1, 16], strides = [1, 1]} : vector<16x32xf32> to vector<1x16xf32>
    %c1_96 = arith.constant 1 : index
    %c32_97 = arith.constant 32 : index
    %184 = vector.load %arg17[%c1_96, %c32_97] : memref<2x256xf32, #tpu.memory_space<vmem>>, vector<1x16xf32>
    tpu.vector_store %arg17[%c1_96, %c32_97], %183 {strides = array<i32>} : memref<2x256xf32, #tpu.memory_space<vmem>>, vector<1x16xf32>,
    %185 = vector.extract_strided_slice %172 {offsets = [3, 0], sizes = [1, 16], strides = [1, 1]} : vector<16x32xf32> to vector<1x16xf32>
    %c0_98 = arith.constant 0 : index
    %c48_99 = arith.constant 48 : index
    %186 = vector.load %arg17[%c0_98, %c48_99] : memref<2x256xf32, #tpu.memory_space<vmem>>, vector<1x16xf32>
    tpu.vector_store %arg17[%c0_98, %c48_99], %185 {strides = array<i32>} : memref<2x256xf32, #tpu.memory_space<vmem>>, vector<1x16xf32>,
    %187 = vector.extract_strided_slice %172 {offsets = [3, 16], sizes = [1, 16], strides = [1, 1]} : vector<16x32xf32> to vector<1x16xf32>
    %c1_100 = arith.constant 1 : index
    %c48_101 = arith.constant 48 : index
    %188 = vector.load %arg17[%c1_100, %c48_101] : memref<2x256xf32, #tpu.memory_space<vmem>>, vector<1x16xf32>
    tpu.vector_store %arg17[%c1_100, %c48_101], %187 {strides = array<i32>} : memref<2x256xf32, #tpu.memory_space<vmem>>, vector<1x16xf32>,
    %189 = vector.extract_strided_slice %172 {offsets = [4, 0], sizes = [1, 16], strides = [1, 1]} : vector<16x32xf32> to vector<1x16xf32>
    %c0_102 = arith.constant 0 : index
    %c64_103 = arith.constant 64 : index
    %190 = vector.load %arg17[%c0_102, %c64_103] : memref<2x256xf32, #tpu.memory_space<vmem>>, vector<1x16xf32>
    tpu.vector_store %arg17[%c0_102, %c64_103], %189 {strides = array<i32>} : memref<2x256xf32, #tpu.memory_space<vmem>>, vector<1x16xf32>,
    %191 = vector.extract_strided_slice %172 {offsets = [4, 16], sizes = [1, 16], strides = [1, 1]} : vector<16x32xf32> to vector<1x16xf32>
    %c1_104 = arith.constant 1 : index
    %c64_105 = arith.constant 64 : index
    %192 = vector.load %arg17[%c1_104, %c64_105] : memref<2x256xf32, #tpu.memory_space<vmem>>, vector<1x16xf32>
    tpu.vector_store %arg17[%c1_104, %c64_105], %191 {strides = array<i32>} : memref<2x256xf32, #tpu.memory_space<vmem>>, vector<1x16xf32>,
    %193 = vector.extract_strided_slice %172 {offsets = [5, 0], sizes = [1, 16], strides = [1, 1]} : vector<16x32xf32> to vector<1x16xf32>
    %c0_106 = arith.constant 0 : index
    %c80 = arith.constant 80 : index
    %194 = vector.load %arg17[%c0_106, %c80] : memref<2x256xf32, #tpu.memory_space<vmem>>, vector<1x16xf32>
    tpu.vector_store %arg17[%c0_106, %c80], %193 {strides = array<i32>} : memref<2x256xf32, #tpu.memory_space<vmem>>, vector<1x16xf32>,
    %195 = vector.extract_strided_slice %172 {offsets = [5, 16], sizes = [1, 16], strides = [1, 1]} : vector<16x32xf32> to vector<1x16xf32>
    %c1_107 = arith.constant 1 : index
    %c80_108 = arith.constant 80 : index
    %196 = vector.load %arg17[%c1_107, %c80_108] : memref<2x256xf32, #tpu.memory_space<vmem>>, vector<1x16xf32>
    tpu.vector_store %arg17[%c1_107, %c80_108], %195 {strides = array<i32>} : memref<2x256xf32, #tpu.memory_space<vmem>>, vector<1x16xf32>,
    %197 = vector.extract_strided_slice %172 {offsets = [6, 0], sizes = [1, 16], strides = [1, 1]} : vector<16x32xf32> to vector<1x16xf32>
    %c0_109 = arith.constant 0 : index
    %c96 = arith.constant 96 : index
    %198 = vector.load %arg17[%c0_109, %c96] : memref<2x256xf32, #tpu.memory_space<vmem>>, vector<1x16xf32>
    tpu.vector_store %arg17[%c0_109, %c96], %197 {strides = array<i32>} : memref<2x256xf32, #tpu.memory_space<vmem>>, vector<1x16xf32>,
    %199 = vector.extract_strided_slice %172 {offsets = [6, 16], sizes = [1, 16], strides = [1, 1]} : vector<16x32xf32> to vector<1x16xf32>
    %c1_110 = arith.constant 1 : index
    %c96_111 = arith.constant 96 : index
    %200 = vector.load %arg17[%c1_110, %c96_111] : memref<2x256xf32, #tpu.memory_space<vmem>>, vector<1x16xf32>
    tpu.vector_store %arg17[%c1_110, %c96_111], %199 {strides = array<i32>} : memref<2x256xf32, #tpu.memory_space<vmem>>, vector<1x16xf32>,
    %201 = vector.extract_strided_slice %172 {offsets = [7, 0], sizes = [1, 16], strides = [1, 1]} : vector<16x32xf32> to vector<1x16xf32>
    %c0_112 = arith.constant 0 : index
    %c112 = arith.constant 112 : index
    %202 = vector.load %arg17[%c0_112, %c112] : memref<2x256xf32, #tpu.memory_space<vmem>>, vector<1x16xf32>
    tpu.vector_store %arg17[%c0_112, %c112], %201 {strides = array<i32>} : memref<2x256xf32, #tpu.memory_space<vmem>>, vector<1x16xf32>,
    %203 = vector.extract_strided_slice %172 {offsets = [7, 16], sizes = [1, 16], strides = [1, 1]} : vector<16x32xf32> to vector<1x16xf32>
    %c1_113 = arith.constant 1 : index
    %c112_114 = arith.constant 112 : index
    %204 = vector.load %arg17[%c1_113, %c112_114] : memref<2x256xf32, #tpu.memory_space<vmem>>, vector<1x16xf32>
    tpu.vector_store %arg17[%c1_113, %c112_114], %203 {strides = array<i32>} : memref<2x256xf32, #tpu.memory_space<vmem>>, vector<1x16xf32>,
    %205 = vector.extract_strided_slice %172 {offsets = [8, 0], sizes = [1, 16], strides = [1, 1]} : vector<16x32xf32> to vector<1x16xf32>
    %c0_115 = arith.constant 0 : index
    %c128 = arith.constant 128 : index
    %206 = vector.load %arg17[%c0_115, %c128] : memref<2x256xf32, #tpu.memory_space<vmem>>, vector<1x16xf32>
    tpu.vector_store %arg17[%c0_115, %c128], %205 {strides = array<i32>} : memref<2x256xf32, #tpu.memory_space<vmem>>, vector<1x16xf32>,
    %207 = vector.extract_strided_slice %172 {offsets = [8, 16], sizes = [1, 16], strides = [1, 1]} : vector<16x32xf32> to vector<1x16xf32>
    %c1_116 = arith.constant 1 : index
    %c128_117 = arith.constant 128 : index
    %208 = vector.load %arg17[%c1_116, %c128_117] : memref<2x256xf32, #tpu.memory_space<vmem>>, vector<1x16xf32>
    tpu.vector_store %arg17[%c1_116, %c128_117], %207 {strides = array<i32>} : memref<2x256xf32, #tpu.memory_space<vmem>>, vector<1x16xf32>,
    %209 = vector.extract_strided_slice %172 {offsets = [9, 0], sizes = [1, 16], strides = [1, 1]} : vector<16x32xf32> to vector<1x16xf32>
    %c0_118 = arith.constant 0 : index
    %c144 = arith.constant 144 : index
    %210 = vector.load %arg17[%c0_118, %c144] : memref<2x256xf32, #tpu.memory_space<vmem>>, vector<1x16xf32>
    tpu.vector_store %arg17[%c0_118, %c144], %209 {strides = array<i32>} : memref<2x256xf32, #tpu.memory_space<vmem>>, vector<1x16xf32>,
    %211 = vector.extract_strided_slice %172 {offsets = [9, 16], sizes = [1, 16], strides = [1, 1]} : vector<16x32xf32> to vector<1x16xf32>
    %c1_119 = arith.constant 1 : index
    %c144_120 = arith.constant 144 : index
    %212 = vector.load %arg17[%c1_119, %c144_120] : memref<2x256xf32, #tpu.memory_space<vmem>>, vector<1x16xf32>
    tpu.vector_store %arg17[%c1_119, %c144_120], %211 {strides = array<i32>} : memref<2x256xf32, #tpu.memory_space<vmem>>, vector<1x16xf32>,
    %213 = vector.extract_strided_slice %172 {offsets = [10, 0], sizes = [1, 16], strides = [1, 1]} : vector<16x32xf32> to vector<1x16xf32>
    %c0_121 = arith.constant 0 : index
    %c160 = arith.constant 160 : index
    %214 = vector.load %arg17[%c0_121, %c160] : memref<2x256xf32, #tpu.memory_space<vmem>>, vector<1x16xf32>
    tpu.vector_store %arg17[%c0_121, %c160], %213 {strides = array<i32>} : memref<2x256xf32, #tpu.memory_space<vmem>>, vector<1x16xf32>,
    %215 = vector.extract_strided_slice %172 {offsets = [10, 16], sizes = [1, 16], strides = [1, 1]} : vector<16x32xf32> to vector<1x16xf32>
    %c1_122 = arith.constant 1 : index
    %c160_123 = arith.constant 160 : index
    %216 = vector.load %arg17[%c1_122, %c160_123] : memref<2x256xf32, #tpu.memory_space<vmem>>, vector<1x16xf32>
    tpu.vector_store %arg17[%c1_122, %c160_123], %215 {strides = array<i32>} : memref<2x256xf32, #tpu.memory_space<vmem>>, vector<1x16xf32>,
    %217 = vector.extract_strided_slice %172 {offsets = [11, 0], sizes = [1, 16], strides = [1, 1]} : vector<16x32xf32> to vector<1x16xf32>
    %c0_124 = arith.constant 0 : index
    %c176 = arith.constant 176 : index
    %218 = vector.load %arg17[%c0_124, %c176] : memref<2x256xf32, #tpu.memory_space<vmem>>, vector<1x16xf32>
    tpu.vector_store %arg17[%c0_124, %c176], %217 {strides = array<i32>} : memref<2x256xf32, #tpu.memory_space<vmem>>, vector<1x16xf32>,
    %219 = vector.extract_strided_slice %172 {offsets = [11, 16], sizes = [1, 16], strides = [1, 1]} : vector<16x32xf32> to vector<1x16xf32>
    %c1_125 = arith.constant 1 : index
    %c176_126 = arith.constant 176 : index
    %220 = vector.load %arg17[%c1_125, %c176_126] : memref<2x256xf32, #tpu.memory_space<vmem>>, vector<1x16xf32>
    tpu.vector_store %arg17[%c1_125, %c176_126], %219 {strides = array<i32>} : memref<2x256xf32, #tpu.memory_space<vmem>>, vector<1x16xf32>,
    %221 = vector.extract_strided_slice %172 {offsets = [12, 0], sizes = [1, 16], strides = [1, 1]} : vector<16x32xf32> to vector<1x16xf32>
    %c0_127 = arith.constant 0 : index
    %c192 = arith.constant 192 : index
    %222 = vector.load %arg17[%c0_127, %c192] : memref<2x256xf32, #tpu.memory_space<vmem>>, vector<1x16xf32>
    tpu.vector_store %arg17[%c0_127, %c192], %221 {strides = array<i32>} : memref<2x256xf32, #tpu.memory_space<vmem>>, vector<1x16xf32>,
    %223 = vector.extract_strided_slice %172 {offsets = [12, 16], sizes = [1, 16], strides = [1, 1]} : vector<16x32xf32> to vector<1x16xf32>
    %c1_128 = arith.constant 1 : index
    %c192_129 = arith.constant 192 : index
    %224 = vector.load %arg17[%c1_128, %c192_129] : memref<2x256xf32, #tpu.memory_space<vmem>>, vector<1x16xf32>
    tpu.vector_store %arg17[%c1_128, %c192_129], %223 {strides = array<i32>} : memref<2x256xf32, #tpu.memory_space<vmem>>, vector<1x16xf32>,
    %225 = vector.extract_strided_slice %172 {offsets = [13, 0], sizes = [1, 16], strides = [1, 1]} : vector<16x32xf32> to vector<1x16xf32>
    %c0_130 = arith.constant 0 : index
    %c208 = arith.constant 208 : index
    %226 = vector.load %arg17[%c0_130, %c208] : memref<2x256xf32, #tpu.memory_space<vmem>>, vector<1x16xf32>
    tpu.vector_store %arg17[%c0_130, %c208], %225 {strides = array<i32>} : memref<2x256xf32, #tpu.memory_space<vmem>>, vector<1x16xf32>,
    %227 = vector.extract_strided_slice %172 {offsets = [13, 16], sizes = [1, 16], strides = [1, 1]} : vector<16x32xf32> to vector<1x16xf32>
    %c1_131 = arith.constant 1 : index
    %c208_132 = arith.constant 208 : index
    %228 = vector.load %arg17[%c1_131, %c208_132] : memref<2x256xf32, #tpu.memory_space<vmem>>, vector<1x16xf32>
    tpu.vector_store %arg17[%c1_131, %c208_132], %227 {strides = array<i32>} : memref<2x256xf32, #tpu.memory_space<vmem>>, vector<1x16xf32>,
    %229 = vector.extract_strided_slice %172 {offsets = [14, 0], sizes = [1, 16], strides = [1, 1]} : vector<16x32xf32> to vector<1x16xf32>
    %c0_133 = arith.constant 0 : index
    %c224 = arith.constant 224 : index
    %230 = vector.load %arg17[%c0_133, %c224] : memref<2x256xf32, #tpu.memory_space<vmem>>, vector<1x16xf32>
    tpu.vector_store %arg17[%c0_133, %c224], %229 {strides = array<i32>} : memref<2x256xf32, #tpu.memory_space<vmem>>, vector<1x16xf32>,
    %231 = vector.extract_strided_slice %172 {offsets = [14, 16], sizes = [1, 16], strides = [1, 1]} : vector<16x32xf32> to vector<1x16xf32>
    %c1_134 = arith.constant 1 : index
    %c224_135 = arith.constant 224 : index
    %232 = vector.load %arg17[%c1_134, %c224_135] : memref<2x256xf32, #tpu.memory_space<vmem>>, vector<1x16xf32>
    tpu.vector_store %arg17[%c1_134, %c224_135], %231 {strides = array<i32>} : memref<2x256xf32, #tpu.memory_space<vmem>>, vector<1x16xf32>,
    %233 = vector.extract_strided_slice %172 {offsets = [15, 0], sizes = [1, 16], strides = [1, 1]} : vector<16x32xf32> to vector<1x16xf32>
    %c0_136 = arith.constant 0 : index
    %c240 = arith.constant 240 : index
    %234 = vector.load %arg17[%c0_136, %c240] : memref<2x256xf32, #tpu.memory_space<vmem>>, vector<1x16xf32>
    tpu.vector_store %arg17[%c0_136, %c240], %233 {strides = array<i32>} : memref<2x256xf32, #tpu.memory_space<vmem>>, vector<1x16xf32>,
    %235 = vector.extract_strided_slice %172 {offsets = [15, 16], sizes = [1, 16], strides = [1, 1]} : vector<16x32xf32> to vector<1x16xf32>
    %c1_137 = arith.constant 1 : index
    %c240_138 = arith.constant 240 : index
    %236 = vector.load %arg17[%c1_137, %c240_138] : memref<2x256xf32, #tpu.memory_space<vmem>>, vector<1x16xf32>
    tpu.vector_store %arg17[%c1_137, %c240_138], %235 {strides = array<i32>} : memref<2x256xf32, #tpu.memory_space<vmem>>, vector<1x16xf32>,
    %c0_139 = arith.constant 0 : index
    %c0_140 = arith.constant 0 : index
    %237 = vector.load %arg17[%c0_139, %c0_140] : memref<2x256xf32, #tpu.memory_space<vmem>>, vector<2x256xf32>
    %c0_141 = arith.constant 0 : index
    %c0_142 = arith.constant 0 : index
    %238 = vector.load %arg12[%c0_141, %c0_142] : memref<256x32xf32, #tpu.memory_space<vmem>>, vector<256x32xf32>
    %cst_143 = arith.constant dense<0.000000e+00> : vector<2x32xf32>
    %239 = tpu.matmul %237, %238, %cst_143 {dimension_numbers = #tpu.dot_dimension_numbers<[1], [0], [0], [1], [0, 0, 1, 1], [], []>} : vector<2x256xf32>, vector<256x32xf32>, vector<2x32xf32> -> vector<2x32xf32>
    %cst_144 = arith.constant 0.000000e+00 : f32
    %240 = vector.broadcast %cst_144 : f32 to vector<2x32xf32>
    %241 = arith.maximumf %239, %240 : vector<2x32xf32>
    %c0_145 = arith.constant 0 : index
    %c0_146 = arith.constant 0 : index
    %242 = vector.load %arg13[%c0_145, %c0_146] : memref<32x4xf32, #tpu.memory_space<vmem>>, vector<32x4xf32>
    %cst_147 = arith.constant dense<0.000000e+00> : vector<2x4xf32>
    %243 = tpu.matmul %241, %242, %cst_147 {dimension_numbers = #tpu.dot_dimension_numbers<[1], [0], [0], [1], [0, 0, 1, 1], [], []>} : vector<2x32xf32>, vector<32x4xf32>, vector<2x4xf32> -> vector<2x4xf32>
    %c0_148 = arith.constant 0 : index
    %c0_149 = arith.constant 0 : index
    %244 = vector.load %arg14[%c0_148, %c0_149] : memref<2x4xf32, #tpu.memory_space<vmem>>, vector<2x4xf32>
    tpu.vector_store %arg14[%c0_148, %c0_149], %243 {strides = array<i32>} : memref<2x4xf32, #tpu.memory_space<vmem>>, vector<2x4xf32>,
    return
  }
  func.func @transform_0(%arg0: i32) -> (i32, i32) {
    %c0_i32 = arith.constant 0 : i32
    %c0_i32_0 = arith.constant 0 : i32
    %c0_i32_1 = arith.constant 0 : i32
    return %c0_i32, %c0_i32_0 : i32, i32
  }
  func.func @transform_1(%arg0: i32) -> (i32, i32) {
    %c0_i32 = arith.constant 0 : i32
    %c0_i32_0 = arith.constant 0 : i32
    %c0_i32_1 = arith.constant 0 : i32
    return %c0_i32, %c0_i32_0 : i32, i32
  }
  func.func @transform_2(%arg0: i32) -> (i32, i32) {
    %c0_i32 = arith.constant 0 : i32
    %c0_i32_0 = arith.constant 0 : i32
    %c0_i32_1 = arith.constant 0 : i32
    return %c0_i32, %c0_i32_0 : i32, i32
  }
  func.func @transform_3(%arg0: i32) -> (i32, i32) {
    %c0_i32 = arith.constant 0 : i32
    %c0_i32_0 = arith.constant 0 : i32
    %c0_i32_1 = arith.constant 0 : i32
    return %c0_i32, %c0_i32_0 : i32, i32
  }
  func.func @transform_4(%arg0: i32) -> (i32, i32) {
    %c0_i32 = arith.constant 0 : i32
    %c0_i32_0 = arith.constant 0 : i32
    %c0_i32_1 = arith.constant 0 : i32
    return %c0_i32, %c0_i32_0 : i32, i32
  }
  func.func @transform_5(%arg0: i32) -> (i32, i32) {
    %c0_i32 = arith.constant 0 : i32
    %c0_i32_0 = arith.constant 0 : i32
    %c0_i32_1 = arith.constant 0 : i32
    return %c0_i32, %c0_i32_0 : i32, i32
  }
  func.func @transform_6(%arg0: i32) -> (i32, i32) {
    %c0_i32 = arith.constant 0 : i32
    %c0_i32_0 = arith.constant 0 : i32
    %c0_i32_1 = arith.constant 0 : i32
    return %c0_i32, %c0_i32_0 : i32, i32
  }
  func.func @transform_7(%arg0: i32) -> (i32, i32) {
    %c0_i32 = arith.constant 0 : i32
    %c0_i32_0 = arith.constant 0 : i32
    %c0_i32_1 = arith.constant 0 : i32
    return %c0_i32, %c0_i32_0 : i32, i32
  }
  func.func @transform_8(%arg0: i32) -> (i32, i32) {
    %c0_i32 = arith.constant 0 : i32
    %c0_i32_0 = arith.constant 0 : i32
    %c0_i32_1 = arith.constant 0 : i32
    return %c0_i32, %c0_i32_0 : i32, i32
  }
  func.func @transform_9(%arg0: i32) -> (i32, i32) {
    %c0_i32 = arith.constant 0 : i32
    %c0_i32_0 = arith.constant 0 : i32
    %c0_i32_1 = arith.constant 0 : i32
    return %c0_i32, %c0_i32_0 : i32, i32
  }
  func.func @transform_10(%arg0: i32) -> (i32, i32) {
    %c0_i32 = arith.constant 0 : i32
    %c0_i32_0 = arith.constant 0 : i32
    %c0_i32_1 = arith.constant 0 : i32
    return %c0_i32, %c0_i32_0 : i32, i32
  }
  func.func @transform_11(%arg0: i32) -> (i32, i32) {
    %c0_i32 = arith.constant 0 : i32
    %c0_i32_0 = arith.constant 0 : i32
    %c0_i32_1 = arith.constant 0 : i32
    return %c0_i32, %c0_i32_0 : i32, i32
  }
  func.func @transform_12(%arg0: i32) -> (i32, i32) {
    %c0_i32 = arith.constant 0 : i32
    %c0_i32_0 = arith.constant 0 : i32
    %c0_i32_1 = arith.constant 0 : i32
    return %c0_i32, %c0_i32_0 : i32, i32
  }
  func.func @transform_13(%arg0: i32) -> (i32, i32) {
    %c0_i32 = arith.constant 0 : i32
    %c0_i32_0 = arith.constant 0 : i32
    %c0_i32_1 = arith.constant 0 : i32
    return %c0_i32, %c0_i32_0 : i32, i32
  }
}

</mosaic_0001>

<bundles_post_ra>
// kernel: tpu_custom_call.1
= control target key start
LH: loop header
LB: loop body
LE: loop exit
PB: predicated region body
PF: predicated region fallthrough
CT: control target
= control target key end

     0   :  { %18 = vsyncpa [#allocation6], 0  ;;  %s3123_s0 = inlined_call_operand.vmem [shape: f32[2,512], index: 0, kind: input, shape index: {}]   ;;  %s3124_s1 = inlined_call_operand.hbm [shape: f32[8,18], index: 1, kind: input, shape index: {}]   ;;  %s3125_s2 = inlined_call_operand.hbm [shape: f32[9,512], index: 2, kind: input, shape index: {}]   ;;  %s3126_s3 = inlined_call_operand.vmem [shape: f32[8,1], index: 3, kind: input, shape index: {}]   ;;  %s3127_s4 = inlined_call_operand.vmem [shape: f32[8,1], index: 4, kind: input, shape index: {}]   ;;  %s3128_s5 = inlined_call_operand.vmem [shape: f32[512,128], index: 5, kind: input, shape index: {}]   ;;  %s3129_s6 = inlined_call_operand.hbm [shape: f32[16,72], index: 6, kind: input, shape index: {}]   ;;  %s3130_s7 = inlined_call_operand.hbm [shape: f32[9,128], index: 7, kind: input, shape index: {}]   ;;  %s3131_s8 = inlined_call_operand.vmem [shape: f32[16,1], index: 8, kind: input, shape index: {}]   ;;  %s3132_s9 = inlined_call_operand.vmem [shape: f32[16,1], index: 9, kind: input, shape index: {}]   ;;  %s3133_s10 = inlined_call_operand.vmem [shape: f32[128,32], index: 10, kind: input, shape index: {}]   ;;  %s3134_s11 = inlined_call_operand.vmem [shape: f32[256,32], index: 11, kind: input, shape index: {}]   ;;  %s3135_s12 = inlined_call_operand.vmem [shape: f32[32,4], index: 12, kind: input, shape index: {}]   ;;  %s3136_s13 = inlined_call_operand.hbm [shape: f32[2,4], index: 13, kind: output, shape index: {}]  }
   0x1   :  { %19 = vsyncpa [#allocation9], 0 }
   0x2   :  { %20 = vsyncpa [#allocation12], 0 }
   0x3   :  { %21 = vsyncpa [#allocation7], 0  ;;  %s2265_s25 = smov [#allocation8]   ;;  %s2147_s29 = scalar_lea.hbm %s3125_s2, 1024 }
   0x4   :  { %s39_s26 = sshll.u32 %s2265_s25, 4  ;;  %p2148_p0 = scmp.ne.s32.totalorder %s3125_s2, %s2147_s29  ;;  %s40_s26 = int_to_ptr.vmem [resolvable:$true] %s39_s26 }
   0x5   :  { %p2151_p1 = scmp.lt.u32.totalorder %s2147_s29, %s3125_s2 }
   0x7   :  { %p2153_p2 = pnand %p2151_p1, %p2148_p0 }
   0x9   :  { %2156 = shalt.err (!%p2153_p2)
}
   0xa   :  { %s2157_s17 = scalar_lea.vmem %s40_s26, 1024  ;;  %p2162_p4 = scmp.lt.s32.totalorder %s40_s26, %s40_s26 }
   0xb   :  { %p2158_p3 = scmp.ne.s32.totalorder %s40_s26, %s2157_s17  ;;  %p2163_p5 = scmp.lt.s32.totalorder %s2157_s17, %s2157_s17 }
   0xd   :  { %p2164_p6 = por %p2163_p5, %p2162_p4 }
   0xf   :  { %p2165_p7 = pnand %p2164_p6, %p2158_p3 }
  0x11   :  { %2168 = shalt.err (!%p2165_p7)
}
  0x12   :  { %s2266_s18 = smov 512   ;;  %s2267_s19 = smov 32  }
  0x13   :  { %45 = dma.hbm_to_vmem [thread:$0]  %s3125_s2, 1024, %s40_s26, [#allocation9], %s2266_s18, %s2266_s18, %s2267_s19  }
  0x14   :  { %s2268_s22 = smov [#allocation5]   ;;  %s2269_s24 = smov [#allocation10]  }
  0x15   :  { %s30_s23 = sshll.u32 %s2268_s22, 4  ;;  %s57_s25 = sshll.u32 %s2269_s24, 4  ;;  %s31_s23 = int_to_ptr.vmem [resolvable:$true] %s30_s23  ;;  %s58_s25 = int_to_ptr.vmem [resolvable:$true] %s57_s25 }
  0x16   :  { %s2169_s29 = scalar_lea.hbm %s3124_s1, 128 }
  0x17   :  { %p2170_p8 = scmp.ne.s32.totalorder %s3124_s1, %s2169_s29  ;;  %p2173_p9 = scmp.lt.u32.totalorder %s2169_s29, %s3124_s1 }
  0x19   :  { %p2175_p10 = pnand %p2173_p9, %p2170_p8 }
  0x1b   :  { %2178 = shalt.err (!%p2175_p10)
}
  0x1c   :  { %s2179_s2 = scalar_lea.vmem %s31_s23, 128  ;;  %p2184_p12 = scmp.lt.s32.totalorder %s31_s23, %s31_s23 }
  0x1d   :  { %p2180_p11 = scmp.ne.s32.totalorder %s31_s23, %s2179_s2  ;;  %p2185_p13 = scmp.lt.s32.totalorder %s2179_s2, %s2179_s2 }
  0x1f   :  { %p2186_p0 = por %p2185_p13, %p2184_p12 }
  0x21   :  { %p2187_p1 = pnand %p2186_p0, %p2180_p11 }
  0x23   :  { %2190 = shalt.err (!%p2187_p1)
}
  0x24   :  { %33 = dma.hbm_to_vmem [thread:$0]  %s3124_s1, 128, %s31_s23, [#allocation6]  }
  0x25   :  { %s2191_s21 = scalar_lea.hbm %s3129_s6, 256 }
  0x26   :  { %p2192_p2 = scmp.ne.s32.totalorder %s3129_s6, %s2191_s21  ;;  %p2195_p3 = scmp.lt.u32.totalorder %s2191_s21, %s3129_s6 }
  0x28   :  { %p2197_p4 = pnand %p2195_p3, %p2192_p2 }
  0x2a   :  { %2200 = shalt.err (!%p2197_p4)
}
  0x2b   :  { %s2201_s29 = scalar_lea.vmem %s58_s25, 256  ;;  %p2206_p6 = scmp.lt.s32.totalorder %s58_s25, %s58_s25 }
  0x2c   :  { %p2202_p5 = scmp.ne.s32.totalorder %s58_s25, %s2201_s29  ;;  %p2207_p7 = scmp.lt.s32.totalorder %s2201_s29, %s2201_s29 }
  0x2e   :  { %p2208_p8 = por %p2207_p7, %p2206_p6 }
  0x30   :  { %p2209_p9 = pnand %p2208_p8, %p2202_p5 }
  0x32   :  { %2212 = shalt.err (!%p2209_p9)
}
  0x33   :  { %s2270_s1 = smov 128   ;;  %s2271_s23 = smov 8  }
  0x34   :  { %63 = dma.hbm_to_vmem [thread:$0]  %s3129_s6, 256, %s58_s25, [#allocation9], %s2270_s1, %s2270_s1, %s2271_s23  }
  0x35   :  { %s2272_s15 = smov [#allocation11]   ;;  %s2213_s17 = scalar_lea.hbm %s3130_s7, 256 }
  0x36   :  { %s69_s16 = sshll.u32 %s2272_s15, 4  ;;  %p2214_p10 = scmp.ne.s32.totalorder %s3130_s7, %s2213_s17  ;;  %s70_s16 = int_to_ptr.vmem [resolvable:$true] %s69_s16 }
  0x37   :  { %p2217_p11 = scmp.lt.u32.totalorder %s2213_s17, %s3130_s7 }
  0x39   :  { %p2219_p12 = pnand %p2217_p11, %p2214_p10 }
  0x3b   :  { %2222 = shalt.err (!%p2219_p12)
}
  0x3c   :  { %s2223_s24 = scalar_lea.vmem %s70_s16, 256  ;;  %p2228_p0 = scmp.lt.s32.totalorder %s70_s16, %s70_s16 }
  0x3d   :  { %p2224_p13 = scmp.ne.s32.totalorder %s70_s16, %s2223_s24  ;;  %p2229_p1 = scmp.lt.s32.totalorder %s2223_s24, %s2223_s24 }
  0x3f   :  { %p2230_p2 = por %p2229_p1, %p2228_p0 }
  0x41   :  { %p2231_p3 = pnand %p2230_p2, %p2224_p13 }
  0x43   :  { %2234 = shalt.err (!%p2231_p3)
}
  0x44   :  { %75 = dma.hbm_to_vmem [thread:$0]  %s3130_s7, 256, %s70_s16, [#allocation12], %s2270_s1, %s2270_s1, %s2271_s23  }
  0x45   :  { %2257 = dma.done.wait [#allocation6], 128  }
  0x46   :  { %2258 = vsyncadd [#allocation6], 4294967168 }
  0x47   :  { %2259 = dma.done.wait [#allocation9], 1280  }
  0x48   :  { %2260 = vsyncadd [#allocation9], 4294966016 }
  0x49   :  { %2261 = dma.done.wait [#allocation12], 256  }
  0x4a   :  { %2262 = vsyncadd [#allocation12], 4294967040  ;;  %v105_v0 = vlaneseq  ;;  %v2273_v1 = vmov 1983009808   ;;  %v98_v6 = vld [vmem:[%s3123_s0] sm:$0xff]  ;;  %s2274_s7 = smov 15  }
  0x4b   :  { %v103_v2 = vunpack.c.l.s4 %v2273_v1  ;;  %1724 = vst.sshfl [vmem:[#allocation2 + $0x20] sm:$0x3 pattern:$0x76325410] %v98_v6  ;;  %v101_v8 = vcombine.high %v98_v6, %v98_v6  ;;  %s2275_s29 = smov 16   ;;  %s2276_s1 = smov 1  }
  0x4c   :  { %v2417_v3 = vshrl.u32 %v105_v0, 7  ;;  %s2277_s0 = smov 127   ;;  %s2278_s30 = smov 113   ;;  %v2282_v12 = vmov 0.0   ;;  %vm236_vm0 = vcmask 121856   ;;  %vm297_vm1 = vcmask 7168  }
  0x4d   :  { %v104_v4 = vunpack.c.0.s8 %v103_v2  ;;  %1725 = vst.sshfl [vmem:[#allocation2 + $0x30] sm:$0x3 pattern:$0x76325410] %v101_v8  ;;  %s2279_s14 = smov 112   ;;  %s2280_s15 = smov 17   ;;  %682 = vmatprep.mubr.f32.mxu1 %v2282_v12 }
  0x4e   :  { %s2281_s16 = smov 111   ;;  %v2449_v13 = vsub.s32 1, %v2417_v3  ;;  %v2451_v14 = vld [vmem:[#allocation8 + $0x2] ss:$8 sm:$0xf]  ;;  %vm175_vm2 = vcmask 130048  }
  0x4f   :  { %v2420_v5 = vsub.s32 %v104_v4, %v2417_v3  ;;  %v2455_v18 = vld [vmem:[#allocation8 + $0x3] ss:$8 sm:$0xf]  ;;  %v2457_v19 = vld [vmem:[#allocation8 + $0x1] ss:$8 sm:$0xf] }
  0x50   :  { %v255_v17 = vrot.slane %v2451_v14, %v2449_v13  ;;  %v316_v24 = vrot.slane %v2455_v18, %v2449_v13  ;;  %v194_v25 = vrot.slane %v2457_v19, %v2449_v13  ;;  %v2469_v26 = vld [vmem:[#allocation8 + $0x5] ss:$8 sm:$0xf]  ;;  %vm365_vm3 = vcmask 1039360   ;;  %s2285_s6 = smov 9   ;;  %s2286_s25 = smov 7  }
  0x51   :  { %v108_v7 = vrot.slane %v98_v6, %v2420_v5  ;;  %v115_v10 = vrot.slane %v101_v8, %v2420_v5  ;;  %v385_v34 = vrot.slane %v2469_v26, %v2449_v13  ;;  %v2482_v35 = vld [vmem:[#allocation8 + $0x6] ss:$8 sm:$0xf]  ;;  %vm426_vm4 = vcmask 924672   ;;  %s2288_s27 = smov 119   ;;  %s2290_s22 = smov 64  }
  0x52   :  { %v446_v42 = vrot.slane %v2482_v35, %v2449_v13  ;;  %v2490_v43 = vld [vmem:[#allocation8 + $0x7] ss:$8 sm:$0xf]  ;;  %vm487_vm5 = vcmask 916480   ;;  %v2499_v50 = vsub.s32 0, %v2417_v3  ;;  %vm127_vm6 = vcmask 138240  }
  0x53   :  { %230 = vrot.lane.b32.xlu1 %v108_v7, %s2274_s7  ;;  %169 = vrot.lane.b32.xlu0 %v108_v7, %s2275_s29  ;;  %v120_v9 = vcombine.high %v108_v7, %v108_v7  ;;  %v116_v11 = vcombine.high %v115_v10, %v115_v10  ;;  %v507_v49 = vrot.slane %v2490_v43, %v2449_v13  ;;  %vm548_vm7 = vcmask 908288   ;;  %s2295_s21 = smov [#allocation13]  }
  0x54   :  { %v251_v56 = vrot.slane %v2451_v14, %v2499_v50  ;;  %v190_v57 = vrot.slane %v2457_v19, %v2499_v50  ;;  %v381_v1 = vrot.slane %v2469_v26, %v2499_v50  ;;  %v312_v2 = vrot.slane %v2455_v18, %v2499_v50  ;;  %s1713_s24 = sshll.u32 %s2295_s21, 4  ;;  %s1714_s24 = int_to_ptr.vmem [resolvable:$true] %s1713_s24 }
  0x55   :  { %354 = vst [vmem:[#allocation2 + $0x28] sm:$0x3] %v120_v9  ;;  %356 = vst [vmem:[#allocation2 + $0x38] sm:$0x3] %v116_v11  ;;  %vm605_vm8 = vcmask 1041408   ;;  %vm601_vm9 = vcmask 146432   ;;  %p2240_p5 = scmp.lt.s32.totalorder %s1714_s24, %s1714_s24 }
  0x56   :  { %vm1108_vm10 = vcmask 588800   ;;  %vm1334_vm11 = vcmask 122880   ;;  %vm1353_vm12 = vcmask 254080   ;;  %vm1361_vm13 = vcmask 385280  }
  0x57   :  { %291 = vrot.lane.b32.xlu0 %v108_v7, %s2276_s1  ;;  %232 = vrot.lane.b32.xlu1 %v120_v9, %s2274_s7  ;;  %vm1372_vm14 = vcmask 516480   ;;  %vm1389_vm15 = vcmask 647680  }
  0x5b   :  { %293 = vrot.lane.b32.xlu1 %v120_v9, %s2276_s1  ;;  %171 = vrot.lane.b32.xlu0 %v120_v9, %s2275_s29 }
  0x5f   :  { %359 = vrot.lane.b32.xlu0 %v120_v9, %s2277_s0  ;;  %361 = vrot.lane.b32.xlu1 %v115_v10, %s2277_s0 }
  0x63   :  { %420 = vrot.lane.b32.xlu0 %v120_v9, %s2278_s30  ;;  %422 = vrot.lane.b32.xlu1 %v115_v10, %s2278_s30 }
  0x67   :  { %481 = vrot.lane.b32.xlu0 %v120_v9, %s2279_s14  ;;  %483 = vrot.lane.b32.xlu1 %v115_v10, %s2279_s14 }
  0x6b   :  { %227 = vrot.lane.b32.xlu1 %v116_v11, %s2274_s7  ;;  %166 = vrot.lane.b32.xlu0 %v116_v11, %s2275_s29 }
  0x6f   :  { %357 = vrot.lane.b32.xlu1 %v108_v7, %s2277_s0  ;;  %288 = vrot.lane.b32.xlu0 %v116_v11, %s2276_s1 }
  0x73   :  { %479 = vrot.lane.b32.xlu1 %v108_v7, %s2279_s14  ;;  %418 = vrot.lane.b32.xlu0 %v108_v7, %s2278_s30 }
  0x77   :  { %123 = vrot.lane.b32.xlu1 %v120_v9, %s2280_s15  ;;  %121 = vrot.lane.b32.xlu0 %v108_v7, %s2280_s15 }
  0x7b   :  { %173 = vrot.lane.b32.xlu1 %v115_v10, %s2275_s29  ;;  %117 = vrot.lane.b32.xlu0 %v116_v11, %s2280_s15 }
  0x7f   :  { %295 = vrot.lane.b32.xlu1 %v115_v10, %s2276_s1  ;;  %234 = vrot.lane.b32.xlu0 %v115_v10, %s2274_s7 }
  0x83   :  { %424 = vrot.lane.b32.xlu1 %v116_v11, %s2278_s30  ;;  %363 = vrot.lane.b32.xlu0 %v116_v11, %s2277_s0 }
  0x87   :  { %125 = vrot.lane.b32.xlu1 %v115_v10, %s2280_s15  ;;  %485 = vrot.lane.b32.xlu0 %v116_v11, %s2279_s14 }
  0x8b   :  { %544 = vrot.lane.b32.xlu1 %v115_v10, %s2281_s16  ;;  %542 = vrot.lane.b32.xlu0 %v120_v9, %s2281_s16 }
  0x8f   :  { %546 = vrot.lane.b32.xlu1 %v116_v11, %s2281_s16  ;;  %540 = vrot.lane.b32.xlu0 %v108_v7, %s2281_s16 }
  0xc5   :  { %v231_v15 = vpop.permute.xlu1 %230  ;;  %v170_v16 = vpop.permute.xlu0 %169 }
  0xc9   :  { %v2459_v20 = vpop.permute.xlu0 %291  ;;  %v2461_v21 = vpop.permute.xlu1 %232 }
  0xca   :  { %v237_v22 = vsel %vm236_vm0, %v231_v15, %v2461_v21 }
  0xcb   :  { %v269_v23 = vmul.f32 %v255_v17, %v237_v22  ;;  %v442_v17 = vrot.slane %v2482_v35, %v2499_v50  ;;  %v2528_v22 = vld [vmem:[#allocation8] ss:$8 sm:$0xf] }
  0xcd   :  { %v277_v27 = vrot.slane %v269_v23, 4  ;;  %v2471_v28 = vpop.permute.xlu1 %293  ;;  %v2473_v29 = vpop.permute.xlu0 %171 }
  0xce   :  { %v298_v30 = vsel %vm297_vm1, %v2459_v20, %v2471_v28  ;;  %v176_v31 = vsel %vm175_vm2, %v170_v16, %v2473_v29 }
  0xcf   :  { %285 = vst [vmem:[#allocation2 + $0x8] sm:$0x30] %v277_v27  ;;  %v330_v32 = vmul.f32 %v316_v24, %v298_v30  ;;  %v208_v33 = vmul.f32 %v194_v25, %v176_v31  ;;  %v145_v31 = vrot.slane %v2528_v22, %v2449_v13 }
  0xd1   :  { %v338_v36 = vrot.slane %v330_v32, 2  ;;  %v216_v37 = vrot.slane %v208_v33, 6  ;;  %v360_v38 = vpop.permute.xlu0 %359  ;;  %v2484_v39 = vpop.permute.xlu1 %361 }
  0xd2   :  { %v367_v40 = vsel %vm365_vm3, %v360_v38, %v2484_v39 }
  0xd3   :  { %346 = vst [vmem:[#allocation2 + $0x8] sm:$0xc0] %v338_v36  ;;  %224 = vst [vmem:[#allocation2 + $0x8] sm:$0xc] %v216_v37  ;;  %v399_v41 = vmul.f32 %v385_v34, %v367_v40  ;;  %v2541_v34 = vsub.s32 2, %v2417_v3  ;;  %v2544_v36 = vsub.s32 3, %v2417_v3  ;;  %v141_v3 = vrot.slane %v2528_v22, %v2499_v50 }
  0xd5   :  { %v407_v44 = vrot.slane %v399_v41, 6  ;;  %v421_v45 = vpop.permute.xlu0 %420  ;;  %v2492_v46 = vpop.permute.xlu1 %422 }
  0xd6   :  { %v428_v47 = vsel %vm426_vm4, %v421_v45, %v2492_v46 }
  0xd7   :  { %415 = vst [vmem:[#allocation2 + $0x28] sm:$0xc] %v407_v44  ;;  %v460_v48 = vmul.f32 %v446_v42, %v428_v47  ;;  %v202_v47 = vrot.slane %v2457_v19, %v2544_v36 }
  0xd9   :  { %v468_v51 = vrot.slane %v460_v48, 4  ;;  %v482_v52 = vpop.permute.xlu0 %481  ;;  %v2501_v53 = vpop.permute.xlu1 %483 }
  0xda   :  { %v489_v54 = vsel %vm487_vm5, %v482_v52, %v2501_v53 }
  0xdb   :  { %476 = vst [vmem:[#allocation2 + $0x28] sm:$0x30] %v468_v51  ;;  %v521_v55 = vmul.f32 %v507_v49, %v489_v54  ;;  %v320_v51 = vrot.slane %v2455_v18, %v2541_v34 }
  0xdd   :  { %v529_v58 = vrot.slane %v521_v55, 2  ;;  %v2509_v59 = vpop.permute.xlu1 %227  ;;  %v167_v60 = vpop.permute.xlu0 %166 }
  0xde   :  { %v244_v61 = vsel %vm236_vm0, %v2509_v59, %v231_v15  ;;  %v183_v62 = vsel %vm175_vm2, %v167_v60, %v170_v16  ;;  %v503_v16 = vrot.slane %v2490_v43, %v2499_v50 }
  0xdf   :  { %537 = vst [vmem:[#allocation2 + $0x28] sm:$0xc0] %v529_v58  ;;  %v268_v63 = vmul.f32 %v251_v56, %v244_v61  ;;  %v207_v0 = vmul.f32 %v190_v57, %v183_v62  ;;  %v259_v56 = vrot.slane %v2451_v14, %v2541_v34  ;;  %v263_v62 = vrot.slane %v2451_v14, %v2544_v36 }
  0xe1   :  { %v276_v4 = vrot.slane %v268_v63, 4  ;;  %v215_v6 = vrot.slane %v207_v0, 6  ;;  %v2518_v7 = vpop.permute.xlu1 %357  ;;  %v289_v8 = vpop.permute.xlu0 %288 }
  0xe2   :  { %v366_v9 = vsel %vm365_vm3, %v2518_v7, %v360_v38  ;;  %v305_v10 = vsel %vm297_vm1, %v289_v8, %v2459_v20 }
  0xe3   :  { %284 = vst [vmem:[#allocation2] sm:$0x30] %v276_v4  ;;  %223 = vst [vmem:[#allocation2] sm:$0xc] %v215_v6  ;;  %v398_v11 = vmul.f32 %v381_v1, %v366_v9  ;;  %v329_v15 = vmul.f32 %v312_v2, %v305_v10  ;;  %v389_v2 = vrot.slane %v2469_v26, %v2541_v34 }
  0xe4   :  { %v393_v4 = vrot.slane %v2469_v26, %v2544_v36  ;;  %v149_v26 = vrot.slane %v2528_v22, %v2541_v34 }
  0xe5   :  { %v406_v23 = vrot.slane %v398_v11, 6  ;;  %v337_v24 = vrot.slane %v329_v15, 2  ;;  %v2530_v25 = vpop.permute.xlu1 %479  ;;  %v2532_v27 = vpop.permute.xlu0 %418 }
  0xe6   :  { %v488_v20 = vsel %vm487_vm5, %v2530_v25, %v482_v52  ;;  %v427_v30 = vsel %vm426_vm4, %v2532_v27, %v421_v45  ;;  %v198_v45 = vrot.slane %v2457_v19, %v2541_v34  ;;  %v324_v52 = vrot.slane %v2455_v18, %v2544_v36 }
  0xe7   :  { %414 = vst [vmem:[#allocation2 + $0x20] sm:$0xc] %v406_v23  ;;  %345 = vst [vmem:[#allocation2] sm:$0xc0] %v337_v24  ;;  %v520_v32 = vmul.f32 %v503_v16, %v488_v20  ;;  %v459_v33 = vmul.f32 %v442_v17, %v427_v30  ;;  %v450_v18 = vrot.slane %v2482_v35, %v2541_v34 }
  0xe8   :  { %v2594_v17 = vld [vmem:[#allocation8 + $0x20] ss:$8 sm:$0xf] }
  0xe9   :  { %v528_v37 = vrot.slane %v520_v32, 2  ;;  %v467_v38 = vrot.slane %v459_v33, 4  ;;  %v2546_v40 = vpop.permute.xlu1 %123  ;;  %v122_v41 = vpop.permute.xlu0 %121 }
  0xea   :  { %v128_v42 = vsel %vm127_vm6, %v122_v41, %v2546_v40 }
  0xeb   :  { %536 = vst [vmem:[#allocation2 + $0x20] sm:$0xc0] %v528_v37  ;;  %475 = vst [vmem:[#allocation2 + $0x20] sm:$0x30] %v467_v38  ;;  %v159_v44 = vmul.f32 %v145_v31, %v128_v42 }
  0xed   :  { %163 = vst [vmem:[#allocation2 + $0x8] sm:$0x3] %v159_v44  ;;  %v174_v48 = vpop.permute.xlu1 %173  ;;  %v2556_v49 = vpop.permute.xlu0 %117 }
  0xee   :  { %v177_v54 = vsel %vm175_vm2, %v2473_v29, %v174_v48  ;;  %v178_v55 = vsel %vm175_vm2, %v174_v48, %v167_v60  ;;  %v135_v19 = vsel %vm127_vm6, %v2556_v49, %v122_v41  ;;  %v454_v29 = vrot.slane %v2482_v35, %v2544_v36 }
  0xef   :  { %v209_v57 = vmul.f32 %v198_v45, %v177_v54  ;;  %v210_v58 = vmul.f32 %v202_v47, %v178_v55  ;;  %v158_v61 = vmul.f32 %v141_v3, %v135_v19  ;;  %v594_v45 = vld [vmem:[#allocation2 + $0x28] sm:$0xff]  ;;  %vm1421_vm2 = vcmask 1041280  }
  0xf1   :  { %v217_v63 = vrot.slane %v209_v57, 6  ;;  %v218_v60 = vrot.slane %v210_v58, 6  ;;  %162 = vst [vmem:[#allocation2] sm:$0x3] %v158_v61  ;;  %v296_v0 = vpop.permute.xlu1 %295  ;;  %v235_v1 = vpop.permute.xlu0 %234 }
  0xf2   :  { %v299_v14 = vsel %vm297_vm1, %v2471_v28, %v296_v0  ;;  %v300_v6 = vsel %vm297_vm1, %v296_v0, %v289_v8  ;;  %v238_v9 = vsel %vm236_vm0, %v2461_v21, %v235_v1  ;;  %v239_v35 = vsel %vm236_vm0, %v235_v1, %v2509_v59 }
  0xf3   :  { %225 = vst [vmem:[#allocation2 + $0x10] sm:$0xc] %v217_v63  ;;  %226 = vst [vmem:[#allocation2 + $0x18] sm:$0xc] %v218_v60  ;;  %v331_v10 = vmul.f32 %v320_v51, %v299_v14  ;;  %v332_v11 = vmul.f32 %v324_v52, %v300_v6  ;;  %v270_v15 = vmul.f32 %v259_v56, %v238_v9  ;;  %vm1400_vm0 = vcmask 778880  }
  0xf4   :  { %v271_v16 = vmul.f32 %v263_v62, %v239_v35  ;;  %v153_v28 = vrot.slane %v2528_v22, %v2544_v36  ;;  %v511_v8 = vrot.slane %v2490_v43, %v2541_v34  ;;  %v515_v21 = vrot.slane %v2490_v43, %v2544_v36  ;;  %v590_v32 = vld [vmem:[#allocation2 + $0x8] sm:$0xff]  ;;  %v593_v62 = vld [vmem:[#allocation2 + $0x20] sm:$0xff] }
  0xf5   :  { %v339_v59 = vrot.slane %v331_v10, 2  ;;  %v340_v23 = vrot.slane %v332_v11, 2  ;;  %v278_v24 = vrot.slane %v270_v15, 4  ;;  %v425_v30 = vpop.permute.xlu1 %424  ;;  %v364_v31 = vpop.permute.xlu0 %363  ;;  %v1950_v47 = vpack.c.bf16 %v594_v45, %v590_v32  ;;  %v99_v15 = vld [vmem:[#allocation5] sm:$0xff] }
  0xf6   :  { %v279_v20 = vrot.slane %v271_v16, 4  ;;  %v429_v33 = vsel %vm426_vm4, %v2492_v46, %v425_v30  ;;  %v435_v22 = vsel %vm426_vm4, %v425_v30, %v2532_v27  ;;  %v368_v37 = vsel %vm365_vm3, %v2484_v39, %v364_v31  ;;  %v811_v45 = vld [vmem:[%s3128_s5] sm:$0xff] }
  0xf7   :  { %v374_v43 = vsel %vm365_vm3, %v364_v31, %v2518_v7  ;;  %347 = vst [vmem:[#allocation2 + $0x10] sm:$0xc0] %v339_v59  ;;  %348 = vst [vmem:[#allocation2 + $0x18] sm:$0xc0] %v340_v23  ;;  %v461_v38 = vmul.f32 %v450_v18, %v429_v33  ;;  %v462_v41 = vmul.f32 %v454_v29, %v435_v22  ;;  %1951 = vmatprep.subr.bf16.mxu1 %v1950_v47  ;;  %v760_v22 = vld [vmem:[%s3126_s3] sm:$0xff]  ;;  %v812_v47 = vld [vmem:[%s3128_s5 + $0x8] sm:$0xff] }
  0xf8   :  { %286 = vst [vmem:[#allocation2 + $0x10] sm:$0x30] %v278_v24  ;;  %287 = vst [vmem:[#allocation2 + $0x18] sm:$0x30] %v279_v20  ;;  %v400_v42 = vmul.f32 %v389_v2, %v368_v37  ;;  %v401_v44 = vmul.f32 %v393_v4, %v374_v43  ;;  %v568_v46 = vrot.slane %v2594_v17, %v2449_v13  ;;  %v589_v52 = vld [vmem:[#allocation2] sm:$0xff]  ;;  %v2283_v37 = vmov 0  }
  0xf9   :  { %v469_v27 = vrot.slane %v461_v38, 4  ;;  %v470_v3 = vrot.slane %v462_v41, 4  ;;  %v126_v51 = vpop.permute.xlu1 %125  ;;  %v486_v7 = vpop.permute.xlu0 %485  ;;  %v1952_v18 = vpack.c.bf16 %v593_v62, %v589_v52  ;;  %v572_v60 = vrot.slane %v2594_v17, %v2541_v34  ;;  %2139 = vset.pattern.permute.xlu0 %v2283_v37  ;;  %2140 = vset.pattern.permute.xlu1 %v2283_v37  ;;  %v827_v43 = vld [vmem:[%s3128_s5 + $0x80] sm:$0xff]  ;;  %v828_v38 = vld [vmem:[%s3128_s5 + $0x88] sm:$0xff]  ;;  %v861_v52 = vld [vmem:[%s3128_s5 + $0x190] sm:$0xff]  ;;  %s2287_s3 = smov 121  }
  0xfa   :  { %v408_v39 = vrot.slane %v400_v42, 6  ;;  %v409_v48 = vrot.slane %v401_v44, 6  ;;  %v129_v54 = vsel %vm127_vm6, %v2546_v40, %v126_v51  ;;  %v130_v55 = vsel %vm127_vm6, %v126_v51, %v2556_v49  ;;  %v859_v41 = vld [vmem:[%s3128_s5 + $0x180] sm:$0xff]  ;;  %v860_v44 = vld [vmem:[%s3128_s5 + $0x188] sm:$0xff] }
  0xfb   :  { %v490_v19 = vsel %vm487_vm5, %v2501_v53, %v486_v7  ;;  %v496_v13 = vsel %vm487_vm5, %v486_v7, %v2530_v25  ;;  %477 = vst [vmem:[#allocation2 + $0x30] sm:$0x30] %v469_v27  ;;  %478 = vst [vmem:[#allocation2 + $0x38] sm:$0x30] %v470_v3  ;;  %v160_v56 = vmul.f32 %v149_v26, %v129_v54  ;;  %1953 = vmatpush1.bf16.msra.mxu1 %v1952_v18  ;;  %v843_v3 = vld [vmem:[%s3128_s5 + $0x100] sm:$0xff]  ;;  %v830_v7 = vld [vmem:[%s3128_s5 + $0x98] sm:$0xff] }
  0xfc   :  { %416 = vst [vmem:[#allocation2 + $0x30] sm:$0xc] %v408_v39  ;;  %417 = vst [vmem:[#allocation2 + $0x38] sm:$0xc] %v409_v48  ;;  %v161_v57 = vmul.f32 %v153_v28, %v130_v55  ;;  %v522_v58 = vmul.f32 %v511_v8, %v490_v19  ;;  %v523_v61 = vmul.f32 %v515_v21, %v496_v13  ;;  %v844_v39 = vld [vmem:[%s3128_s5 + $0x108] sm:$0xff]  ;;  %v829_v48 = vld [vmem:[%s3128_s5 + $0x90] sm:$0xff] }
  0xfd   :  { %164 = vst [vmem:[#allocation2 + $0x10] sm:$0x3] %v160_v56  ;;  %v545_v29 = vpop.permute.xlu1 %544  ;;  %v543_v63 = vpop.permute.xlu0 %542  ;;  %v564_v0 = vrot.slane %v2594_v17, %v2499_v50  ;;  %v576_v1 = vrot.slane %v2594_v17, %v2544_v36  ;;  %v1958_v42 = vpack.c.bf16 %v828_v38, %v827_v43  ;;  %v1960_v27 = vpack.c.bf16 %v812_v47, %v811_v45  ;;  %v862_v54 = vld [vmem:[%s3128_s5 + $0x198] sm:$0xff]  ;;  %v813_v13 = vld [vmem:[%s3128_s5 + $0x10] sm:$0xff]  ;;  %v835_v37 = vld [vmem:[%s3128_s5 + $0xc0] sm:$0xff] }
  0xfe   :  { %165 = vst [vmem:[#allocation2 + $0x18] sm:$0x3] %v161_v57  ;;  %v530_v40 = vrot.slane %v522_v58, 2  ;;  %v531_v49 = vrot.slane %v523_v61, 2  ;;  %v550_v53 = vsel %vm548_vm7, %v543_v63, %v545_v29  ;;  %v1992_v51 = vpack.c.bf16 %v844_v39, %v843_v3  ;;  %v814_v56 = vld [vmem:[%s3128_s5 + $0x18] sm:$0xff]  ;;  %v845_v57 = vld [vmem:[%s3128_s5 + $0x110] sm:$0xff] }
  0xff   :  { %v582_v25 = vmul.f32 %v568_v46, %v550_v53  ;;  %v1990_v46 = vpack.c.bf16 %v860_v44, %v859_v41  ;;  %1959 = vmatprep.subr.bf16.mxu0 %v1958_v42  ;;  %v1962_v55 = vpack.c.bf16 %v830_v7, %v829_v48  ;;  %v1994_v19 = vpack.c.bf16 %v862_v54, %v861_v52  ;;  %v846_v61 = vld [vmem:[%s3128_s5 + $0x118] sm:$0xff]  ;;  %v836_v38 = vld [vmem:[%s3128_s5 + $0xc8] sm:$0xff]  ;;  %v867_v41 = vld [vmem:[%s3128_s5 + $0x1c0] sm:$0xff] }
 0x100   :  { %538 = vst [vmem:[#allocation2 + $0x30] sm:$0xc0] %v530_v40  ;;  %539 = vst [vmem:[#allocation2 + $0x38] sm:$0xc0] %v531_v49  ;;  %1961 = vmatpush3.bf16.msra.mxu0 %v1960_v27  ;;  %v1964_v58 = vpack.c.bf16 %v814_v56, %v813_v13  ;;  %v1996_v62 = vpack.c.bf16 %v846_v61, %v845_v57  ;;  %v868_v42 = vld [vmem:[%s3128_s5 + $0x1c8] sm:$0xff]  ;;  %v1974_v44 = vpack.c.bf16 %v836_v38, %v835_v37  ;;  %v819_v47 = vld [vmem:[%s3128_s5 + $0x40] sm:$0xff] }
 0x101   :  { %586 = vst [vmem:[#allocation2 + $0x48] sm:$0x3] %v582_v25  ;;  %v547_v2 = vpop.permute.xlu1 %546  ;;  %v541_v4 = vpop.permute.xlu0 %540  ;;  %1963 = vmatprep.subr.bf16.mxu0 %v1962_v55  ;;  %v2006_v45 = vpack.c.bf16 %v868_v42, %v867_v41  ;;  %v851_v27 = vld [vmem:[%s3128_s5 + $0x140] sm:$0xff]  ;;  %v852_v39 = vld [vmem:[%s3128_s5 + $0x148] sm:$0xff]  ;;  %v837_v48 = vld [vmem:[%s3128_s5 + $0xd0] sm:$0xff]  ;;  %vm1410_vm1 = vcmask 910080  }
 0x102   :  { %v551_v14 = vsel %vm548_vm7, %v545_v29, %v547_v2  ;;  %v549_v6 = vsel %vm548_vm7, %v541_v4, %v543_v63  ;;  %v557_v9 = vsel %vm548_vm7, %v547_v2, %v541_v4  ;;  %v2008_v7 = vpack.c.bf16 %v852_v39, %v851_v27  ;;  %v869_v54 = vld [vmem:[%s3128_s5 + $0x1d0] sm:$0xff]  ;;  %v870_v55 = vld [vmem:[%s3128_s5 + $0x1d8] sm:$0xff] }
 0x103   :  { %v583_v35 = vmul.f32 %v572_v60, %v551_v14  ;;  %v581_v10 = vmul.f32 %v564_v0, %v549_v6  ;;  %v584_v11 = vmul.f32 %v576_v1, %v557_v9  ;;  %v761_v6 = vld [vmem:[%s3127_s4] sm:$0xff]  ;;  %v2010_v13 = vpack.c.bf16 %v870_v55, %v869_v54  ;;  %v822_v56 = vld [vmem:[%s3128_s5 + $0x58] sm:$0xff]  ;;  %v853_v57 = vld [vmem:[%s3128_s5 + $0x150] sm:$0xff] }
 0x104   :  { %v591_v8 = vld [vmem:[#allocation2 + $0x10] sm:$0xff]  ;;  %1965 = vmatpush3.bf16.msra.mxu0 %v1964_v58  ;;  %v831_v9 = vld [vmem:[%s3128_s5 + $0xa0] sm:$0xff]  ;;  %v854_v58 = vld [vmem:[%s3128_s5 + $0x158] sm:$0xff]  ;;  %vm2294_vm3 = vmmov 0   ;;  %vm1631_vm4 = vcmask 261120   ;;  %vm1705_vm5 = vcmask 25600  }
 0x105   :  { %587 = vst [vmem:[#allocation2 + $0x50] sm:$0x3] %v583_v35  ;;  %585 = vst [vmem:[#allocation2 + $0x40] sm:$0x3] %v581_v10  ;;  %v592_v16 = vld [vmem:[#allocation2 + $0x18] sm:$0xff]  ;;  %v832_v35 = vld [vmem:[%s3128_s5 + $0xa8] sm:$0xff] }
 0x106   :  { %588 = vst [vmem:[#allocation2 + $0x58] sm:$0x3] %v584_v11  ;;  %v863_v10 = vld [vmem:[%s3128_s5 + $0x1a0] sm:$0xff]  ;;  %v1966_v11 = vpack.c.bf16 %v832_v35, %v831_v9  ;;  %v856_v9 = vld [vmem:[%s3128_s5 + $0x168] sm:$0xff] }
 0x107   :  { %v596_v34 = vld [vmem:[#allocation2 + $0x38] sm:$0xff]  ;;  %v595_v36 = vld [vmem:[#allocation2 + $0x30] sm:$0xff] }
 0x108   :  { %v598_v50 = vld [vmem:[#allocation2 + $0x48] sm:$0x3]  ;;  %v1954_v28 = vpack.c.bf16 %v596_v34, %v592_v16  ;;  %v1956_v21 = vpack.c.bf16 %v595_v36, %v591_v8  ;;  %v815_v34 = vld [vmem:[%s3128_s5 + $0x20] sm:$0xff]  ;;  %1967 = vmatprep.subr.bf16.mxu0 %v1966_v11  ;;  %v842_v11 = vld [vmem:[%s3128_s5 + $0xf8] sm:$0xff] }
 0x109   :  { %1726 = vmatprep.subr.msk.mxu1 %vm605_vm8, %v598_v50  ;;  %v864_v50 = vld [vmem:[%s3128_s5 + $0x1a8] sm:$0xff] }
 0x10a   :  { %v816_v36 = vld [vmem:[%s3128_s5 + $0x28] sm:$0xff] }
 0x10b   :  { %v1968_v16 = vpack.c.bf16 %v816_v36, %v815_v34  ;;  %v874_v36 = vld [vmem:[%s3128_s5 + $0x1f8] sm:$0xff]  ;;  %v1015_v54 = vld [vmem:[#allocation10] sm:$0xff] }
 0x10c   :  { %v597_v26 = vld [vmem:[#allocation2 + $0x40] sm:$0x3]  ;;  %v599_v59 = vld [vmem:[#allocation2 + $0x50] sm:$0x3] }
 0x10d   :  { %1727 = vmatpush1.msk.msra.mxu1 %vm605_vm8, %v597_v26  ;;  %v600_v17 = vld [vmem:[#allocation2 + $0x58] sm:$0x3]  ;;  %v847_v26 = vld [vmem:[%s3128_s5 + $0x120] sm:$0xff]  ;;  %1969 = vmatpush3.bf16.msra.mxu0 %v1968_v16 }
 0x10e   :  { %1728 = vmatmul.mubr.msk.f32.vlgmr.msra.gmra.mrb[0].mxu1 %vm601_vm9, %v99_v15  ;;  %1955 = vmatprep.subr.bf16.mxu1 %v1954_v28  ;;  %v848_v28 = vld [vmem:[%s3128_s5 + $0x128] sm:$0xff]  ;;  %v826_v16 = vld [vmem:[%s3128_s5 + $0x78] sm:$0xff] }
 0x10f   :  { %1957 = vmatpush1.bf16.msra.mxu1 %v1956_v21  ;;  %753 = vmatprep.mubr.f32.mxu1 %v2282_v12  ;;  %v2000_v8 = vpack.c.bf16 %v848_v28, %v847_v26  ;;  %v833_v21 = vld [vmem:[%s3128_s5 + $0xb0] sm:$0xff] }
 0x110   :  { %1729 = vmatprep.subr.msk.mxu1 %vm605_vm8, %v600_v17  ;;  %v834_v17 = vld [vmem:[%s3128_s5 + $0xb8] sm:$0xff] }
 0x113   :  { %1730 = vmatpush1.msk.msra.mxu1 %vm605_vm8, %v599_v59  ;;  %v865_v59 = vld [vmem:[%s3128_s5 + $0x1b0] sm:$0xff] }
 0x114   :  { %1731 = vmatmul.mubr.msk.f32.vlgmr.msra.gmra.mrb[2].mxu1 %vm601_vm9, %v99_v15  ;;  %1991 = vmatprep.subr.bf16.mxu1 %v1990_v46  ;;  %v1998_v15 = vpack.c.bf16 %v864_v50, %v863_v10  ;;  %v820_v46 = vld [vmem:[%s3128_s5 + $0x48] sm:$0xff]  ;;  %v841_v10 = vld [vmem:[%s3128_s5 + $0xf0] sm:$0xff] }
 0x115   :  { %1993 = vmatpush3.bf16.msra.mxu1 %v1992_v51  ;;  %v1976_v3 = vpack.c.bf16 %v820_v46, %v819_v47  ;;  %v838_v51 = vld [vmem:[%s3128_s5 + $0xd8] sm:$0xff]  ;;  %v873_v50 = vld [vmem:[%s3128_s5 + $0x1f0] sm:$0xff]  ;;  %v1986_v34 = vpack.c.bf16 %v842_v11, %v841_v10 }
 0x116   :  { %1995 = vmatprep.subr.bf16.mxu1 %v1994_v19  ;;  %v1978_v52 = vpack.c.bf16 %v838_v51, %v837_v48  ;;  %v821_v19 = vld [vmem:[%s3128_s5 + $0x50] sm:$0xff]  ;;  %v2018_v26 = vpack.c.bf16 %v874_v36, %v873_v50  ;;  %v1739_v36 = vld [vmem:[#allocation11 + $0x8] ss:$0 sm:$0xff] }
 0x117   :  { %v1980_v61 = vpack.c.bf16 %v822_v56, %v821_v19  ;;  %v1732_v19 = vld [vmem:[#allocation11] ss:$0 sm:$0xff] }
 0x119   :  { %1997 = vmatpush3.bf16.msra.mxu1 %v1996_v62  ;;  %v839_v62 = vld [vmem:[%s3128_s5 + $0xe0] sm:$0xff] }
 0x11a   :  { %1999 = vmatprep.subr.bf16.mxu1 %v1998_v15  ;;  %v825_v15 = vld [vmem:[%s3128_s5 + $0x70] sm:$0xff] }
 0x11b   :  { %v1988_v28 = vpack.c.bf16 %v826_v16, %v825_v15 }
 0x11d   :  { %2001 = vmatpush3.bf16.msra.mxu1 %v2000_v8  ;;  %v857_v8 = vld [vmem:[%s3128_s5 + $0x170] sm:$0xff] }
 0x1e1   :  { %v684_v23 = vpop.f32.mrb[0].mxu1 }
 0x1e2   :  { %v686_v24 = vpop.f32.mrb[1].mxu1 }
 0x1e3   :  { %v762_v20 = vadd.f32 %v686_v24, %v684_v23 }
 0x1e7   :  { %v755_v30 = vpop.f32.mrb[2].mxu1 }
 0x1e8   :  { %v763_v31 = vadd.f32 %v762_v20, %v755_v30  ;;  %v757_v32 = vpop.f32.mrb[3].mxu1  ;;  %v817_v20 = vld [vmem:[%s3128_s5 + $0x30] sm:$0xff] }
 0x1ea   :  { %v764_v33 = vadd.f32 %v763_v31, %v757_v32 }
 0x1ec   :  { %765 = vadd.xlane.f32.xlu0 %v764_v33  ;;  %v849_v33 = vld [vmem:[%s3128_s5 + $0x130] sm:$0xff] }
 0x202   :  { %791 = vperm.xlu0 %2139, %v760_v22   ;;  %v850_v22 = vld [vmem:[%s3128_s5 + $0x138] sm:$0xff] }
 0x203   :  { %v2004_v43 = vpack.c.bf16 %v850_v22, %v849_v33 }
 0x279   :  { %v766_v18 = vpop.xlane.xlu0 %765 }
 0x27a   :  { %v768_v40 = vmul.f32 0.001953125, %v766_v18  ;;  %v840_v18 = vld [vmem:[%s3128_s5 + $0xe8] sm:$0xff] }
 0x27c   :  { %v2680_v49 = vsub.f32 %v684_v23, %v768_v40  ;;  %v2682_v29 = vsub.f32 %v686_v24, %v768_v40  ;;  %v2684_v63 = vsub.f32 %v755_v30, %v768_v40  ;;  %v2686_v53 = vsub.f32 %v757_v32, %v768_v40  ;;  %v866_v24 = vld [vmem:[%s3128_s5 + $0x1b8] sm:$0xff]  ;;  %v871_v40 = vld [vmem:[%s3128_s5 + $0x1e0] sm:$0xff] }
 0x27d   :  { %v1970_v23 = vpack.c.bf16 %v834_v17, %v833_v21  ;;  %v818_v30 = vld [vmem:[%s3128_s5 + $0x38] sm:$0xff]  ;;  %v2002_v31 = vpack.c.bf16 %v866_v24, %v865_v59 }
 0x27e   :  { %v773_v25 = vmul.f32 %v2680_v49, %v2680_v49  ;;  %v774_v60 = vmul.f32 %v2682_v29, %v2682_v29  ;;  %v775_v0 = vmul.f32 %v2684_v63, %v2684_v63  ;;  %v776_v2 = vmul.f32 %v2686_v53, %v2686_v53  ;;  %v858_v21 = vld [vmem:[%s3128_s5 + $0x178] sm:$0xff] }
 0x27f   :  { %v1972_v32 = vpack.c.bf16 %v818_v30, %v817_v20  ;;  %1971 = vmatprep.subr.bf16.mxu0 %v1970_v23  ;;  %2003 = vmatprep.subr.bf16.mxu1 %v2002_v31  ;;  %v2020_v17 = vpack.c.bf16 %v858_v21, %v857_v8 }
 0x280   :  { %v777_v1 = vadd.f32 %v774_v60, %v773_v25  ;;  %2005 = vmatpush3.bf16.msra.mxu1 %v2004_v43  ;;  %v2012_v25 = vpack.c.bf16 %v854_v58, %v853_v57  ;;  %v1982_v60 = vpack.c.bf16 %v840_v18, %v839_v62  ;;  %v1734_v18 = vld [vmem:[#allocation11 + $0x2] ss:$0 sm:$0xff] }
 0x281   :  { %1973 = vmatpush3.bf16.msra.mxu0 %v1972_v32  ;;  %2007 = vmatprep.subr.bf16.mxu1 %v2006_v45  ;;  %v792_v30 = vpop.permute.xlu0 %791 }
 0x282   :  { %v778_v4 = vadd.f32 %v777_v1, %v775_v0  ;;  %1975 = vmatprep.subr.bf16.mxu0 %v1974_v44  ;;  %v872_v0 = vld [vmem:[%s3128_s5 + $0x1e8] sm:$0xff] }
 0x283   :  { %v2014_v1 = vpack.c.bf16 %v872_v0, %v871_v40  ;;  %v1735_v40 = vld [vmem:[#allocation11 + $0x3] ss:$0 sm:$0xff] }
 0x284   :  { %v779_v14 = vadd.f32 %v778_v4, %v776_v2  ;;  %2009 = vmatpush3.bf16.msra.mxu1 %v2008_v7  ;;  %v823_v2 = vld [vmem:[%s3128_s5 + $0x60] sm:$0xff]  ;;  %v824_v4 = vld [vmem:[%s3128_s5 + $0x68] sm:$0xff] }
 0x285   :  { %1977 = vmatpush3.bf16.msra.mxu0 %v1976_v3  ;;  %2011 = vmatprep.subr.bf16.mxu1 %v2010_v13  ;;  %v1733_v13 = vld [vmem:[#allocation11 + $0x1] ss:$0 sm:$0xff] }
 0x286   :  { %780 = vadd.xlane.f32.xlu1 %v779_v14  ;;  %1979 = vmatprep.subr.bf16.mxu0 %v1978_v52  ;;  %v855_v14 = vld [vmem:[%s3128_s5 + $0x160] sm:$0xff]  ;;  %s2284_s5 = smov 120  }
 0x287   :  { %v2016_v35 = vpack.c.bf16 %v856_v9, %v855_v14 }
 0x288   :  { %2013 = vmatpush3.bf16.msra.mxu1 %v2012_v25 }
 0x289   :  { %1981 = vmatpush3.bf16.msra.mxu0 %v1980_v61  ;;  %2015 = vmatprep.subr.bf16.mxu1 %v2014_v1  ;;  %v1736_v1 = vld [vmem:[#allocation11 + $0x5] ss:$0 sm:$0xff] }
 0x28a   :  { %1983 = vmatprep.subr.bf16.mxu0 %v1982_v60 }
 0x28c   :  { %2017 = vmatpush3.bf16.msra.mxu1 %v2016_v35  ;;  %v1737_v35 = vld [vmem:[#allocation11 + $0x6] ss:$0 sm:$0xff] }
 0x28d   :  { %2019 = vmatprep.subr.bf16.mxu1 %v2018_v26 }
 0x290   :  { %2021 = vmatpush3.bf16.msra.mxu1 %v2020_v17  ;;  %v1190_v17 = vld [vmem:[%s3131_s8] sm:$0xff] }
 0x297   :  { %800 = vperm.xlu1 %2140, %v761_v6   ;;  %v1984_v6 = vpack.c.bf16 %v824_v4, %v823_v2 }
 0x299   :  { %1985 = vmatpush3.bf16.msra.mxu0 %v1984_v6  ;;  %v1738_v6 = vld [vmem:[#allocation11 + $0x7] ss:$0 sm:$0xff] }
 0x29a   :  { %1987 = vmatprep.subr.bf16.mxu0 %v1986_v34 }
 0x29d   :  { %1989 = vmatpush3.bf16.msra.mxu0 %v1988_v28  ;;  %v1016_v28 = vld [vmem:[#allocation10 + $0x8] sm:$0xff] }
 0x313   :  { %v781_v59 = vpop.xlane.xlu1 %780 }
 0x314   :  { %v782_v23 = vmul.f32 0.001953125, %v781_v59  ;;  %v1192_v59 = vld [vmem:[%s3132_s9] sm:$0xff] }
 0x316   :  { %v783_v24 = vadd.f32 1e-05, %v782_v23  ;;  %v1193_v23 = vld [vmem:[%s3132_s9 + $0x8] sm:$0xff] }
 0x317   :  { %v801_v37 = vpop.permute.xlu1 %800 }
 0x318   :  { %2141 = vrsqrt.f32 %v783_v24  ;;  %v1243_v24 = vld [vmem:[%s3133_s10] sm:$0xff] }
 0x322   :  { %v2142_v20 = vpop.eup %2141 }
 0x323   :  { %v785_v31 = vmul.f32 %v2142_v20, %v2680_v49  ;;  %v787_v32 = vmul.f32 %v2142_v20, %v2684_v63  ;;  %v788_v33 = vmul.f32 %v2142_v20, %v2686_v53  ;;  %v786_v22 = vmul.f32 %v2142_v20, %v2682_v29  ;;  %v1244_v20 = vld [vmem:[%s3133_s10 + $0x8] sm:$0xff] }
 0x325   :  { %v794_v43 = vmul.f32 %v792_v30, %v785_v31  ;;  %v796_v38 = vmul.f32 %v792_v30, %v787_v32  ;;  %v797_v41 = vmul.f32 %v792_v30, %v788_v33  ;;  %v795_v42 = vmul.f32 %v792_v30, %v786_v22 }
 0x326   :  { %v2038_v30 = vpack.c.bf16 %v1244_v20, %v1243_v24 }
 0x327   :  { %v805_v44 = vadd.f32 %v801_v37, %v796_v38  ;;  %v804_v45 = vadd.f32 %v801_v37, %v795_v42  ;;  %v806_v47 = vadd.f32 %v801_v37, %v797_v41  ;;  %v803_v46 = vadd.f32 %v801_v37, %v794_v43  ;;  %v1245_v42 = vld [vmem:[%s3133_s10 + $0x10] sm:$0xff] }
 0x328   :  { %2039 = vmatprep.subr.bf16.mxu1 %v2038_v30 }
 0x329   :  { %v809_v27 = vmax.f32 %v805_v44, 0.0  ;;  %v808_v3 = vmax.f32 %v804_v45, 0.0  ;;  %v810_v39 = vmax.f32 %v806_v47, 0.0  ;;  %v807_v48 = vmax.f32 %v803_v46, 0.0  ;;  %v1246_v44 = vld [vmem:[%s3133_s10 + $0x18] sm:$0xff]  ;;  %v1247_v47 = vld [vmem:[%s3133_s10 + $0x20] sm:$0xff] }
 0x32a   :  { %v2042_v45 = vpack.c.bf16 %v1246_v44, %v1245_v42  ;;  %v1248_v46 = vld [vmem:[%s3133_s10 + $0x28] sm:$0xff]  ;;  %v1531_v42 = vld [vmem:[%s3134_s11 + $0x90] sm:$0xff]  ;;  %v1532_v44 = vld [vmem:[%s3134_s11 + $0x98] sm:$0xff] }
 0x32b   :  { %939 = vmatprep.mubr.f32.mxu0 %v808_v3  ;;  %1009 = vmatprep.mubr.f32.mxu1 %v810_v39  ;;  %v1249_v3 = vld [vmem:[%s3133_s10 + $0x30] sm:$0xff]  ;;  %v1250_v39 = vld [vmem:[%s3133_s10 + $0x38] sm:$0xff] }
 0x32c   :  { %940 = vmatmul.mubr.f32.vlgmr.msra.gmra.mrb[0].mxu0 %v807_v48  ;;  %1010 = vmatmul.mubr.f32.vlgmr.msra.gmra.mrb[4].mxu1 %v809_v27  ;;  %v2046_v27 = vpack.c.bf16 %v1248_v46, %v1247_v47  ;;  %v1191_v48 = vld [vmem:[%s3131_s8 + $0x8] sm:$0xff]  ;;  %s2292_s8 = smov 80   ;;  %v1515_v47 = vld [vmem:[%s3134_s11 + $0x10] sm:$0xff]  ;;  %v1516_v46 = vld [vmem:[%s3134_s11 + $0x18] sm:$0xff] }
 0x32d   :  { %1901 = vmatprep.mubr.msk.f32.mxu0 %vm1108_vm10, %v1015_v54  ;;  %2041 = vmatpush3.bf16.msra.mxu1 %v2038_v30  ;;  %v1255_v54 = vld [vmem:[%s3133_s10 + $0x60] sm:$0xff] }
 0x32e   :  { %2043 = vmatprep.subr.bf16.mxu1 %v2042_v45 }
 0x331   :  { %2045 = vmatpush3.bf16.msra.mxu1 %v2042_v45  ;;  %v2074_v45 = vpack.c.bf16 %v1532_v44, %v1531_v42 }
 0x332   :  { %2047 = vmatprep.subr.bf16.mxu1 %v2046_v27 }
 0x335   :  { %2049 = vmatpush3.bf16.msra.mxu1 %v2046_v27  ;;  %v2076_v27 = vpack.c.bf16 %v1516_v46, %v1515_v47 }
 0x3ff   :  { %v1776_v49 = vpop.f32.mrb[0].mxu0  ;;  %v1811_v63 = vpop.f32.mrb[4].mxu1 }
 0x400   :  { %v1777_v29 = vpop.f32.mrb[1].mxu0  ;;  %v1812_v53 = vpop.f32.mrb[5].mxu1 }
 0x401   :  { %v1778_v51 = vadd.f32 %v1777_v29, %v1776_v49  ;;  %v1813_v7 = vadd.f32 %v1812_v53, %v1811_v63  ;;  %v2050_v49 = vpack.c.bf16 %v1250_v39, %v1249_v3  ;;  %v1251_v63 = vld [vmem:[%s3133_s10 + $0x40] sm:$0xff]  ;;  %v1252_v29 = vld [vmem:[%s3133_s10 + $0x48] sm:$0xff] }
 0x402   :  { %v2054_v53 = vpack.c.bf16 %v1252_v29, %v1251_v63  ;;  %v1517_v29 = vld [vmem:[%s3134_s11 + $0x20] sm:$0xff] }
 0x403   :  { %v1012_v52 = vadd.f32 %v1813_v7, %v1778_v51  ;;  %2051 = vmatprep.subr.bf16.mxu1 %v2050_v49  ;;  %v1253_v51 = vld [vmem:[%s3133_s10 + $0x50] sm:$0xff]  ;;  %v1254_v7 = vld [vmem:[%s3133_s10 + $0x58] sm:$0xff] }
 0x404   :  { %2053 = vmatpush3.bf16.msra.mxu1 %v2050_v49  ;;  %v1534_v49 = vld [vmem:[%s3134_s11 + $0xa8] sm:$0xff] }
 0x405   :  { %1079 = vrot.lane.b32.xlu0 %v1012_v52, %s2284_s5  ;;  %1018 = vrot.lane.b32.xlu1 %v1012_v52, %s2285_s6  ;;  %s2235_s5 = scalar_lea.vmem %s1714_s24, 32 }
 0x406   :  { %2055 = vmatprep.subr.bf16.mxu1 %v2054_v53  ;;  %p2236_p4 = scmp.ne.s32.totalorder %s1714_s24, %s2235_s5  ;;  %p2241_p6 = scmp.lt.s32.totalorder %s2235_s5, %s2235_s5 }
 0x408   :  { %2057 = vmatpush3.bf16.msra.mxu1 %v2054_v53  ;;  %v1518_v53 = vld [vmem:[%s3134_s11 + $0x28] sm:$0xff]  ;;  %p2242_p7 = por %p2241_p6, %p2240_p5 }
 0x409   :  { %1028 = vrot.lane.b32.xlu1 %v1012_v52, %s2271_s23 }
 0x40a   :  { %p2243_p8 = pnand %p2242_p7, %p2236_p4 }
 0x40d   :  { %1038 = vrot.lane.b32.xlu1 %v1012_v52, %s2286_s25 }
 0x411   :  { %1048 = vrot.lane.b32.xlu1 %v1012_v52, %s2276_s1 }
 0x415   :  { %1059 = vrot.lane.b32.xlu1 %v1012_v52, %s2277_s0  ;;  %s2291_s0 = smov 96  }
 0x419   :  { %1069 = vrot.lane.b32.xlu1 %v1012_v52, %s2287_s3 }
 0x41d   :  { %1089 = vrot.lane.b32.xlu1 %v1012_v52, %s2288_s27 }
 0x477   :  { %v1019_v55 = vpop.permute.xlu1 %1018  ;;  %v1080_v9 = vpop.permute.xlu0 %1079 }
 0x478   :  { %v1026_v57 = vmul.f32 %v1732_v19, %v1019_v55  ;;  %v1087_v50 = vmul.f32 %v1738_v6, %v1080_v9  ;;  %v1256_v55 = vld [vmem:[%s3133_s10 + $0x68] sm:$0xff] }
 0x479   :  { %v2062_v19 = vpack.c.bf16 %v1256_v55, %v1255_v54  ;;  %v1535_v54 = vld [vmem:[%s3134_s11 + $0xb0] sm:$0xff]  ;;  %v1536_v55 = vld [vmem:[%s3134_s11 + $0xb8] sm:$0xff] }
 0x47b   :  { %v1029_v56 = vpop.permute.xlu1 %1028 }
 0x47c   :  { %v1036_v58 = vmul.f32 %v1733_v13, %v1029_v56  ;;  %v1257_v13 = vld [vmem:[%s3133_s10 + $0x70] sm:$0xff]  ;;  %v1258_v56 = vld [vmem:[%s3133_s10 + $0x78] sm:$0xff]  ;;  %s2289_s10 = smov 48  }
 0x47e   :  { %v2022_v61 = vpack.c.bf16 %v1036_v58, %v1026_v57  ;;  %v2066_v57 = vpack.c.bf16 %v1258_v56, %v1257_v13  ;;  %v1519_v13 = vld [vmem:[%s3134_s11 + $0x30] sm:$0xff]  ;;  %v1520_v56 = vld [vmem:[%s3134_s11 + $0x38] sm:$0xff] }
 0x47f   :  { %v1039_v62 = vpop.permute.xlu1 %1038 }
 0x480   :  { %2023 = vmatprep.subr.bf16.mxu0 %v2022_v61  ;;  %v1046_v60 = vmul.f32 %v1734_v18, %v1039_v62 }
 0x481   :  { %2025 = vmatpush3.bf16.msra.mxu0 %v2022_v61 }
 0x483   :  { %v1049_v25 = vpop.permute.xlu1 %1048 }
 0x484   :  { %v1056_v0 = vmul.f32 %v1735_v40, %v1049_v25 }
 0x486   :  { %v2026_v2 = vpack.c.bf16 %v1056_v0, %v1046_v60 }
 0x487   :  { %v1060_v4 = vpop.permute.xlu1 %1059 }
 0x488   :  { %v1067_v14 = vmul.f32 %v1736_v1, %v1060_v4  ;;  %2027 = vmatprep.subr.bf16.mxu0 %v2026_v2 }
 0x489   :  { %2029 = vmatpush3.bf16.msra.mxu0 %v2026_v2 }
 0x48a   :  { %v2030_v10 = vpack.c.bf16 %v1067_v14, %v1012_v52  ;;  %v2058_v52 = vpack.c.bf16 %v1254_v7, %v1253_v51  ;;  %v2080_v51 = vpack.c.bf16 %v1518_v53, %v1517_v29 }
 0x48b   :  { %v1070_v11 = vpop.permute.xlu1 %1069 }
 0x48c   :  { %v1077_v34 = vmul.f32 %v1737_v35, %v1070_v11  ;;  %2031 = vmatprep.subr.bf16.mxu0 %v2030_v10  ;;  %2059 = vmatprep.subr.bf16.mxu1 %v2058_v52 }
 0x48d   :  { %2033 = vmatpush3.bf16.msra.mxu0 %v2030_v10  ;;  %2061 = vmatpush3.bf16.msra.mxu1 %v2058_v52 }
 0x48e   :  { %v2034_v15 = vpack.c.bf16 %v1087_v50, %v1077_v34  ;;  %2063 = vmatprep.subr.bf16.mxu1 %v2062_v19 }
 0x48f   :  { %v1090_v16 = vpop.permute.xlu1 %1089 }
 0x490   :  { %v1097_v26 = vmul.f32 %v1739_v36, %v1090_v16  ;;  %2035 = vmatprep.subr.bf16.mxu0 %v2034_v15 }
 0x491   :  { %2037 = vmatpush3.bf16.msra.mxu0 %v2034_v15  ;;  %2065 = vmatpush3.bf16.msra.mxu1 %v2062_v19  ;;  %v2082_v19 = vpack.c.bf16 %v1536_v55, %v1535_v54 }
 0x492   :  { %1899 = vmatprep.subr.mxu0 %v1097_v26  ;;  %2067 = vmatprep.subr.bf16.mxu1 %v2066_v57 }
 0x495   :  { %1900 = vmatpush3.msra.mxu0 %v1097_v26  ;;  %2069 = vmatpush3.bf16.msra.mxu1 %v2066_v57  ;;  %v2084_v57 = vpack.c.bf16 %v1520_v56, %v1519_v13 }
 0x496   :  { %1902 = vmatmul.mubr.msk.f32.vlgmr.msra.gmra.mrb[2].mxu0 %vm1108_vm10, %v1016_v28 }
 0x569   :  { %v1903_v8 = vpop.f32.mrb[2].mxu0 }
 0x56a   :  { %1196 = vadd.xlane.f32.xlu1 %v1903_v8  ;;  %v1181_v21 = vpop.f32.mrb[3].mxu0 }
 0x56b   :  { %1194 = vadd.xlane.f32.xlu0 %v1181_v21 }
 0x57b   :  { %1219 = vperm.xlu1 %2140, %v1190_v17  }
 0x57f   :  { %1231 = vperm.xlu1 %2140, %v1192_v59  }
 0x583   :  { %1236 = vperm.xlu1 %2140, %v1193_v23  }
 0x5f7   :  { %v1197_v31 = vpop.xlane.xlu1 %1196 }
 0x5f8   :  { %v1200_v32 = vmul.f32 0.0078125, %v1197_v31  ;;  %v1195_v33 = vpop.xlane.xlu0 %1194 }
 0x5f9   :  { %v1199_v22 = vmul.f32 0.0078125, %v1195_v33  ;;  %v1529_v33 = vld [vmem:[%s3134_s11 + $0x80] sm:$0xff] }
 0x5fa   :  { %v1202_v37 = vsub.f32 %v1903_v8, %v1200_v32 }
 0x5fb   :  { %v1201_v43 = vsub.f32 %v1181_v21, %v1199_v22  ;;  %v1220_v60 = vpop.permute.xlu1 %1219 }
 0x5fc   :  { %v1204_v38 = vmul.f32 %v1202_v37, %v1202_v37 }
 0x5fd   :  { %v1203_v41 = vmul.f32 %v1201_v43, %v1201_v43 }
 0x5fe   :  { %1207 = vadd.xlane.f32.xlu0 %v1204_v38 }
 0x5ff   :  { %v1232_v1 = vpop.permute.xlu1 %1231 }
 0x602   :  { %1205 = vadd.xlane.f32.xlu0 %v1203_v41 }
 0x603   :  { %v1237_v35 = vpop.permute.xlu1 %1236 }
 0x618   :  { %1224 = vperm.xlu0 %2139, %v1191_v48   ;;  %v1533_v48 = vld [vmem:[%s3134_s11 + $0xa0] sm:$0xff] }
 0x619   :  { %v2078_v63 = vpack.c.bf16 %v1534_v49, %v1533_v48 }
 0x68b   :  { %v1208_v58 = vpop.xlane.xlu0 %1207 }
 0x68c   :  { %v1210_v61 = vmul.f32 0.0078125, %v1208_v58 }
 0x68e   :  { %v1212_v62 = vadd.f32 1e-05, %v1210_v61 }
 0x68f   :  { %v1206_v18 = vpop.xlane.xlu0 %1205 }
 0x690   :  { %2143 = vrsqrt.f32 %v1212_v62  ;;  %v1209_v40 = vmul.f32 0.0078125, %v1206_v18  ;;  %v1537_v62 = vld [vmem:[%s3134_s11 + $0xc0] sm:$0xff]  ;;  %v1538_v18 = vld [vmem:[%s3134_s11 + $0xc8] sm:$0xff] }
 0x692   :  { %v1211_v25 = vadd.f32 1e-05, %v1209_v40  ;;  %v2086_v40 = vpack.c.bf16 %v1538_v18, %v1537_v62 }
 0x694   :  { %2145 = vrsqrt.f32 %v1211_v25  ;;  %v1521_v25 = vld [vmem:[%s3134_s11 + $0x40] sm:$0xff] }
 0x697   :  { %v1225_v4 = vpop.permute.xlu0 %1224 }
 0x69a   :  { %v2144_v0 = vpop.eup %2143 }
 0x69b   :  { %v1216_v2 = vmul.f32 %v2144_v0, %v1202_v37  ;;  %v1513_v37 = vld [vmem:[%s3134_s11] sm:$0xff] }
 0x69d   :  { %v1228_v6 = vmul.f32 %v1225_v4, %v1216_v2  ;;  %v1539_v4 = vld [vmem:[%s3134_s11 + $0xd0] sm:$0xff] }
 0x69e   :  { %v2146_v14 = vpop.eup %2145 }
 0x69f   :  { %v1215_v9 = vmul.f32 %v2146_v14, %v1201_v43  ;;  %v1240_v11 = vadd.f32 %v1237_v35, %v1228_v6  ;;  %v1514_v43 = vld [vmem:[%s3134_s11 + $0x8] sm:$0xff]  ;;  %v1540_v14 = vld [vmem:[%s3134_s11 + $0xd8] sm:$0xff] }
 0x6a0   :  { %v2072_v38 = vpack.c.bf16 %v1514_v43, %v1513_v37  ;;  %v2090_v6 = vpack.c.bf16 %v1540_v14, %v1539_v4  ;;  %v1524_v35 = vld [vmem:[%s3134_s11 + $0x58] sm:$0xff] }
 0x6a1   :  { %v1227_v10 = vmul.f32 %v1220_v60, %v1215_v9  ;;  %v1242_v36 = vmax.f32 %v1240_v11, 0.0  ;;  %v1522_v60 = vld [vmem:[%s3134_s11 + $0x48] sm:$0xff]  ;;  %v1523_v9 = vld [vmem:[%s3134_s11 + $0x50] sm:$0xff] }
 0x6a2   :  { %v2088_v0 = vpack.c.bf16 %v1522_v60, %v1521_v25  ;;  %v2092_v11 = vpack.c.bf16 %v1524_v35, %v1523_v9  ;;  %v1630_v25 = vld [vmem:[%s3135_s12 + $0x18] sm:$0xff] }
 0x6a3   :  { %v1239_v50 = vadd.f32 %v1232_v1, %v1227_v10  ;;  %v1541_v10 = vld [vmem:[%s3134_s11 + $0xe0] sm:$0xff] }
 0x6a5   :  { %v1241_v34 = vmax.f32 %v1239_v50, 0.0  ;;  %v1542_v50 = vld [vmem:[%s3134_s11 + $0xe8] sm:$0xff] }
 0x6a7   :  { %1936 = vmatprep.mubr.f32.mxu1 %v1241_v34  ;;  %v1525_v34 = vld [vmem:[%s3134_s11 + $0x60] sm:$0xff] }
 0x6a8   :  { %1937 = vmatmul.mubr.f32.vlgmr.msra.gmra.mrb[6].mxu1 %v1242_v36  ;;  %v1526_v36 = vld [vmem:[%s3134_s11 + $0x68] sm:$0xff] }
 0x6a9   :  { %1947 = vmatprep.mubr.msk.f32.mxu1 %vm2294_vm3, %v2282_v12 }
 0x77b   :  { %v1938_v15 = vpop.f32.mrb[6].mxu1 }
 0x77c   :  { %1427 = vst.msk [vmem:[#allocation4 + $0x2] sm:$0x1] %vm1334_vm11, %v1938_v15  ;;  %v1435_v16 = vrot.slane %v1938_v15, %v2420_v5  ;;  %v1325_v26 = vpop.f32.mrb[7].mxu1  ;;  %v1467_v8 = vcombine.high %v1938_v15, %v1938_v15 }
 0x77d   :  { %1335 = vst.msk [vmem:[#allocation4] sm:$0x1] %vm1334_vm11, %v1325_v26  ;;  %v1343_v28 = vrot.slane %v1325_v26, %v2420_v5  ;;  %v1378_v59 = vcombine.high %v1325_v26, %v1325_v26  ;;  %v2094_v26 = vpack.c.bf16 %v1542_v50, %v1541_v10 }
 0x77e   :  { %1436 = vrot.lane.b32.xlu1 %v1435_v16, %s2279_s14  ;;  %v1448_v21 = vcombine.high %v1435_v16, %v1435_v16  ;;  %v1474_v17 = vrot.slane %v1467_v8, %v2420_v5  ;;  %v1440_v20 = vrot.slane %v1435_v16, 7  ;;  %v1544_v8 = vld [vmem:[%s3134_s11 + $0xf8] sm:$0xff] }
 0x77f   :  { %1344 = vrot.lane.b32.xlu0 %v1343_v28, %s2279_s14  ;;  %v2923_v23 = vcombine.high %v1343_v28, %v1343_v28  ;;  %v2930_v24 = vrot.slane %v1378_v59, %v2420_v5  ;;  %v1348_v32 = vrot.slane %v1343_v28, 7  ;;  %v1530_v5 = vld [vmem:[%s3134_s11 + $0x88] sm:$0xff]  ;;  %v1543_v28 = vld [vmem:[%s3134_s11 + $0xf0] sm:$0xff] }
 0x780   :  { %v2936_v30 = vrot.slane %v1440_v20, 2  ;;  %v2938_v31 = vcombine.high %v1474_v17, %v1474_v17  ;;  %v2070_v22 = vpack.c.bf16 %v1530_v5, %v1529_v33  ;;  %v1457_v39 = vrot.slane %v1448_v21, 7  ;;  %v1527_v59 = vld [vmem:[%s3134_s11 + $0x70] sm:$0xff]  ;;  %v1627_v5 = vld [vmem:[%s3135_s12] sm:$0xff] }
 0x781   :  { %v2956_v41 = vrot.slane %v1348_v32, 2  ;;  %v2976_v3 = vcombine.high %v2930_v24, %v2930_v24  ;;  %v1483_v52 = vrot.slane %v1474_v17, 7  ;;  %v1367_v61 = vrot.slane %v2923_v23, 7 }
 0x782   :  { %1453 = vrot.lane.b32.xlu1 %v1448_v21, %s2275_s29  ;;  %2071 = vmatprep.subr.bf16.mxu0 %v2070_v22  ;;  %v1458_v7 = vrot.slane %v1457_v39, 2  ;;  %v1395_v2 = vrot.slane %v2930_v24, 7  ;;  %v1502_v20 = vrot.slane %v2938_v31, 7  ;;  %v1628_v22 = vld [vmem:[%s3135_s12 + $0x8] sm:$0xff] }
 0x783   :  { %1449 = vrot.lane.b32.xlu0 %v1448_v21, %s2267_s19  ;;  %2073 = vmatpush3.bf16.msra.mxu0 %v2072_v38  ;;  %v1484_v58 = vrot.slane %v1483_v52, 2  ;;  %v1368_v1 = vrot.slane %v1367_v61, 2  ;;  %v1416_v16 = vrot.slane %v2976_v3, 7  ;;  %v2096_v21 = vpack.c.bf16 %v1526_v36, %v1525_v34 }
 0x784   :  { %2075 = vmatprep.subr.bf16.mxu0 %v2074_v45  ;;  %v1396_v15 = vrot.slane %v1395_v2, 2  ;;  %v1503_v33 = vrot.slane %v1502_v20, 2  ;;  %v2103_v37 = vpack.c.bf16 %v1628_v22, %v1627_v5 }
 0x786   :  { %1479 = vrot.lane.b32.xlu1 %v1474_v17, %s2289_s10 }
 0x787   :  { %1475 = vrot.lane.b32.xlu0 %v1474_v17, %s2290_s22  ;;  %2077 = vmatpush3.bf16.msra.mxu0 %v2076_v27  ;;  %v2098_v17 = vpack.c.bf16 %v1544_v8, %v1543_v28 }
 0x788   :  { %2079 = vmatprep.subr.bf16.mxu0 %v2078_v63 }
 0x78a   :  { %1363 = vrot.lane.b32.xlu1 %v2923_v23, %s2275_s29 }
 0x78b   :  { %1358 = vrot.lane.b32.xlu0 %v2923_v23, %s2267_s19  ;;  %2081 = vmatpush3.bf16.msra.mxu0 %v2080_v51  ;;  %v1528_v23 = vld [vmem:[%s3134_s11 + $0x78] sm:$0xff] }
 0x78c   :  { %2083 = vmatprep.subr.bf16.mxu0 %v2082_v19  ;;  %v2100_v32 = vpack.c.bf16 %v1528_v23, %v1527_v59 }
 0x78e   :  { %1391 = vrot.lane.b32.xlu1 %v2930_v24, %s2289_s10 }
 0x78f   :  { %1386 = vrot.lane.b32.xlu0 %v2930_v24, %s2290_s22  ;;  %2085 = vmatpush3.bf16.msra.mxu0 %v2084_v57  ;;  %v1417_v24 = vrot.slane %v1416_v16, 2 }
 0x790   :  { %2087 = vmatprep.subr.bf16.mxu0 %v2086_v40  ;;  %v1629_v40 = vld [vmem:[%s3135_s12 + $0x10] sm:$0xff] }
 0x791   :  { %v2106_v60 = vpack.c.bf16 %v1630_v25, %v1629_v40 }
 0x792   :  { %1442 = vrot.lane.b32.xlu1 %v2936_v30, %s2275_s29 }
 0x793   :  { %1494 = vrot.lane.b32.xlu0 %v2938_v31, %s2291_s0  ;;  %2089 = vmatpush3.bf16.msra.mxu0 %v2088_v0 }
 0x794   :  { %2091 = vmatprep.subr.bf16.mxu0 %v2090_v6 }
 0x796   :  { %1498 = vrot.lane.b32.xlu1 %v2938_v31, %s2292_s8  ;;  %v2293_v31 = vmov 0.0|0.0  }
 0x797   :  { %1350 = vrot.lane.b32.xlu0 %v2956_v41, %s2275_s29  ;;  %2093 = vmatpush3.bf16.msra.mxu0 %v2092_v11 }
 0x798   :  { %2095 = vmatprep.subr.bf16.mxu0 %v2094_v26  ;;  %2102 = vmatprep.subr.bf16.mxu1 %v2293_v31 }
 0x799   :  { %2104 = vmatpush3.bf16.msra.mxu1 %v2103_v37 }
 0x79a   :  { %1412 = vrot.lane.b32.xlu1 %v2976_v3, %s2292_s8  ;;  %2105 = vmatprep.subr.bf16.mxu1 %v2293_v31 }
 0x79b   :  { %1407 = vrot.lane.b32.xlu0 %v2976_v3, %s2291_s0  ;;  %2097 = vmatpush3.bf16.msra.mxu0 %v2096_v21 }
 0x79c   :  { %2099 = vmatprep.subr.bf16.mxu0 %v2098_v17 }
 0x79d   :  { %2107 = vmatpush3.bf16.msra.mxu1 %v2106_v60 }
 0x79e   :  { %1463 = vrot.lane.b32.xlu1 %v1458_v7, %s2267_s19 }
 0x79f   :  { %1459 = vrot.lane.b32.xlu0 %v1458_v7, %s2289_s10  ;;  %2101 = vmatpush3.bf16.msra.mxu0 %v2100_v32 }
 0x7a2   :  { %1489 = vrot.lane.b32.xlu1 %v1484_v58, %s2290_s22 }
 0x7a3   :  { %1485 = vrot.lane.b32.xlu0 %v1484_v58, %s2292_s8 }
 0x7a6   :  { %1374 = vrot.lane.b32.xlu1 %v1368_v1, %s2267_s19 }
 0x7a7   :  { %1369 = vrot.lane.b32.xlu0 %v1368_v1, %s2289_s10 }
 0x7aa   :  { %1402 = vrot.lane.b32.xlu1 %v1396_v15, %s2290_s22 }
 0x7ab   :  { %1397 = vrot.lane.b32.xlu0 %v1396_v15, %s2292_s8 }
 0x7ae   :  { %1423 = vrot.lane.b32.xlu1 %v1417_v24, %s2291_s0 }
 0x7af   :  { %1418 = vrot.lane.b32.xlu0 %v1417_v24, %s2279_s14 }
 0x7b2   :  { %1508 = vrot.lane.b32.xlu1 %v1503_v33, %s2291_s0 }
 0x7b3   :  { %1504 = vrot.lane.b32.xlu0 %v1503_v33, %s2279_s14 }
 0x7f0   :  { %v1437_v43 = vpop.permute.xlu1 %1436 }
 0x7f1   :  { %1439 = vst.msk [vmem:[#allocation4 + $0x3] sm:$0x1] %vm1334_vm11, %v1437_v43  ;;  %v1345_v38 = vpop.permute.xlu0 %1344 }
 0x7f2   :  { %1447 = vst.msk [vmem:[#allocation4 + $0x3] sm:$0x1] %vm1353_vm12, %v2936_v30 }
 0x7f3   :  { %1347 = vst.msk [vmem:[#allocation4 + $0x1] sm:$0x1] %vm1334_vm11, %v1345_v38 }
 0x7f4   :  { %1356 = vst.msk [vmem:[#allocation4 + $0x1] sm:$0x1] %vm1353_vm12, %v2956_v41  ;;  %v1454_v42 = vpop.permute.xlu1 %1453 }
 0x7f5   :  { %1456 = vst.msk [vmem:[#allocation4 + $0x3] sm:$0x1] %vm1361_vm13, %v1454_v42  ;;  %v1450_v44 = vpop.permute.xlu0 %1449 }
 0x7f8   :  { %v1480_v45 = vpop.permute.xlu1 %1479 }
 0x7f9   :  { %v1476_v47 = vpop.permute.xlu0 %1475 }
 0x7fc   :  { %v1364_v46 = vpop.permute.xlu1 %1363 }
 0x7fd   :  { %1366 = vst.msk [vmem:[#allocation4 + $0x1] sm:$0x1] %vm1361_vm13, %v1364_v46  ;;  %v1359_v27 = vpop.permute.xlu0 %1358 }
 0x800   :  { %v1392_v3 = vpop.permute.xlu1 %1391 }
 0x801   :  { %v1387_v39 = vpop.permute.xlu0 %1386 }
 0x804   :  { %v1443_v48 = vpop.permute.xlu1 %1442 }
 0x805   :  { %1445 = vst.msk [vmem:[#allocation4 + $0x2] sm:$0x1] %vm1353_vm12, %v1443_v48  ;;  %v1495_v30 = vpop.permute.xlu0 %1494 }
 0x806   :  { %1452 = vst.msk [vmem:[#allocation4 + $0x2] sm:$0x1] %vm1361_vm13, %v1450_v44 }
 0x808   :  { %v1499_v49 = vpop.permute.xlu1 %1498 }
 0x809   :  { %v1351_v41 = vpop.permute.xlu0 %1350 }
 0x80a   :  { %1354 = vst.msk [vmem:[#allocation4] sm:$0x1] %vm1353_vm12, %v1351_v41 }
 0x80b   :  { %1362 = vst.msk [vmem:[#allocation4] sm:$0x1] %vm1361_vm13, %v1359_v27 }
 0x80c   :  { %v1413_v63 = vpop.permute.xlu1 %1412 }
 0x80d   :  { %v1408_v29 = vpop.permute.xlu0 %1407 }
 0x810   :  { %v1464_v53 = vpop.permute.xlu1 %1463 }
 0x811   :  { %1466 = vst.msk [vmem:[#allocation4 + $0x3] sm:$0x1] %vm1372_vm14, %v1464_v53  ;;  %v1460_v51 = vpop.permute.xlu0 %1459 }
 0x812   :  { %1462 = vst.msk [vmem:[#allocation4 + $0x2] sm:$0x1] %vm1372_vm14, %v1460_v51 }
 0x813   :  { %1482 = vst.msk [vmem:[#allocation4 + $0x3] sm:$0x1] %vm1389_vm15, %v1480_v45  ;;  %1478 = vst.msk [vmem:[#allocation4 + $0x2] sm:$0x1] %vm1389_vm15, %v1476_v47 }
 0x814   :  { %v1490_v7 = vpop.permute.xlu1 %1489 }
 0x815   :  { %1492 = vst.msk [vmem:[#allocation4 + $0x3] sm:$0x1] %vm1400_vm0, %v1490_v7  ;;  %v1486_v52 = vpop.permute.xlu0 %1485 }
 0x816   :  { %1488 = vst.msk [vmem:[#allocation4 + $0x2] sm:$0x1] %vm1400_vm0, %v1486_v52 }
 0x817   :  { %1501 = vst.msk [vmem:[#allocation4 + $0x3] sm:$0x1] %vm1410_vm1, %v1499_v49  ;;  %1497 = vst.msk [vmem:[#allocation4 + $0x2] sm:$0x1] %vm1410_vm1, %v1495_v30 }
 0x818   :  { %v1375_v54 = vpop.permute.xlu1 %1374 }
 0x819   :  { %1377 = vst.msk [vmem:[#allocation4 + $0x1] sm:$0x1] %vm1372_vm14, %v1375_v54  ;;  %v1370_v55 = vpop.permute.xlu0 %1369 }
 0x81a   :  { %1394 = vst.msk [vmem:[#allocation4 + $0x1] sm:$0x1] %vm1389_vm15, %v1392_v3 }
 0x81b   :  { %1373 = vst.msk [vmem:[#allocation4] sm:$0x1] %vm1372_vm14, %v1370_v55 }
 0x81c   :  { %1390 = vst.msk [vmem:[#allocation4] sm:$0x1] %vm1389_vm15, %v1387_v39  ;;  %v1403_v19 = vpop.permute.xlu1 %1402 }
 0x81d   :  { %1405 = vst.msk [vmem:[#allocation4 + $0x1] sm:$0x1] %vm1400_vm0, %v1403_v19  ;;  %v1398_v13 = vpop.permute.xlu0 %1397 }
 0x81e   :  { %1401 = vst.msk [vmem:[#allocation4] sm:$0x1] %vm1400_vm0, %v1398_v13 }
 0x81f   :  { %1415 = vst.msk [vmem:[#allocation4 + $0x1] sm:$0x1] %vm1410_vm1, %v1413_v63  ;;  %1411 = vst.msk [vmem:[#allocation4] sm:$0x1] %vm1410_vm1, %v1408_v29 }
 0x820   :  { %v1424_v56 = vpop.permute.xlu1 %1423 }
 0x821   :  { %1426 = vst.msk [vmem:[#allocation4 + $0x1] sm:$0x1] %vm1421_vm2, %v1424_v56  ;;  %v1419_v57 = vpop.permute.xlu0 %1418 }
 0x822   :  { %1422 = vst.msk [vmem:[#allocation4] sm:$0x1] %vm1421_vm2, %v1419_v57 }
 0x824   :  { %v1509_v58 = vpop.permute.xlu1 %1508 }
 0x825   :  { %1511 = vst.msk [vmem:[#allocation4 + $0x3] sm:$0x1] %vm1421_vm2, %v1509_v58  ;;  %v1505_v61 = vpop.permute.xlu0 %1504 }
 0x826   :  { %1507 = vst.msk [vmem:[#allocation4 + $0x2] sm:$0x1] %vm1421_vm2, %v1505_v61 }
 0x82d   :  { %v1742_v62 = vld.sshfl [vmem:[#allocation4] sm:$0x33 pattern:$0x76325410] }
 0x82e   :  { %v1553_v18 = vcombine.high %v1742_v62, %v1742_v62 }
 0x830   :  { %1620 = vmatprep.mubr.f32.mxu0 %v1553_v18 }
 0x831   :  { %1621 = vmatmul.mubr.f32.vlgmr.msra.gmra.mrb[4].mxu0 %v1742_v62 }
 0x904   :  { %v1875_v0 = vpop.f32.mrb[4].mxu0 }
 0x905   :  { %v1876_v1 = vpop.f32.mrb[5].mxu0 }
 0x906   :  { %v1877_v2 = vadd.f32 %v1876_v1, %v1875_v0 }
 0x908   :  { %v1626_v4 = vmax.f32 %v1877_v2, 0.0 }
 0x90a   :  { %1948 = vmatmul.mubr.msk.f32.vlgmr.msra.gmra.mrb[8].mxu1 %vm1631_vm4, %v1626_v4 }
 0x9dd   :  { %v1701_v14 = vpop.f32.mrb[8].mxu1 }
 0x9de   :  { %v1949_v6 = vpop.f32.mrb[9].mxu1  ;;  %1706 = vst.msk [vmem:[#allocation13] sm:$0x3] %vm1705_vm5, %v1701_v14 }
 0x9df   :  { %2246 = shalt.err (!%p2243_p8)
}
 0x9e0   :  { %s2247_s25 = scalar_lea.hbm %s3136_s13, 32 }
 0x9e1   :  { %p2248_p9 = scmp.ne.s32.totalorder %s3136_s13, %s2247_s25  ;;  %p2251_p10 = scmp.lt.u32.totalorder %s2247_s25, %s3136_s13 }
 0x9e3   :  { %p2253_p11 = pnand %p2251_p10, %p2248_p9 }
 0x9e5   :  { %2256 = shalt.err (!%p2253_p11)
}
 0x9e6   :  { %1716 = dma.vmem_to_hbm [thread:$0]  %s1714_s24, 32, %s3136_s13, [#allocation7]  }
 0x9e7   :  { %2263 = dma.done.wait [#allocation7], 32  }
 0x9e8   :  { %2264 = vsyncadd [#allocation7], 4294967264 }
 0x9e9   :  { %1720 = vsyncpa [#allocation6], 1 }
 0x9ea   :  { %1721 = vsyncpa [#allocation9], 1 }
 0x9eb   :  { %1722 = vsyncpa [#allocation12], 1 }
 0x9ec   :  { %1723 = vsyncpa [#allocation7], 1 }

</bundles_post_ra>
